<compile_context>
chip_gen: v7x
topology: tpu7x:2x2x1
jax: 0.10.0
libtpu: 0.0.40
codegen_flags: <defaults>
</compile_context>

<pallas_src>
import functools

import jax
import jax.numpy as jnp
import numpy as np
from jax import lax
from jax.experimental import pallas as pl
from jax.experimental.pallas import tpu as pltpu

# ---------------- model hyper-parameters (small but structurally faithful) ---
BS = 2            # bs
NSLICE = 8        # n_slice_per_c
IN_CHANS = 3
IMG = 64          # image_size
PATCH = 32        # encoder reduces spatial dims 32x, like EfficientNetV2-S
HF = IMG // PATCH
P = HF * HF       # spatial positions of features[-1]
C_ENC = 64        # channels of encoder features[-1] (stand-in for 256)
FEATS = 128       # conv_head output channels        (stand-in for 1280)
HID = FEATS // 2  # LSTM hidden per direction (bidirectional -> FEATS out)
NCLS = 9
HEAD_PAD = 128    # lane-dense padded head width (real logits = first NCLS cols)
BN_EPS = 1e-3
KIN = IN_CHANS * PATCH * PATCH          # 3072
KT = 2                                  # K tiles for the encoder matmul
PREC = jax.lax.Precision.HIGHEST        # param-prep / pure-JAX reference only


def _detect_batch_grid():
    """Use both TensorCores on v7x (2 TCs/chip); single batch block elsewhere."""
    try:
        kind = jax.devices()[0].device_kind.lower()
    except Exception:  # pragma: no cover
        return 1
    return BS if "v7" in kind else 1


NB = _detect_batch_grid()   # batch-parallel grid blocks
BPB = BS // NB              # batch elements per grid block


# ----------------------------- fused Pallas kernel ----------------------------
def _fused_forward_kernel(patches_ref, wenc_ref, benc_ref, pool_ref,
                          wi_ref, bi_ref, whh_ref, whead_ref, bhead_ref,
                          out_ref, yacc_ref, *, n_batch, seqlen, hid):
    f32 = jnp.float32
    bf16 = jnp.bfloat16
    k = pl.program_id(1)

    # 1) K-tiled folded [patch-embed conv -> conv_head -> bn2 scale] matmul,
    #    bf16 operands, f32 accumulation into a VMEM scratch.
    @pl.when(k == 0)
    def _():
        yacc_ref[...] = jnp.zeros_like(yacc_ref)

    yacc_ref[...] += jnp.dot(patches_ref[...], wenc_ref[...],
                             preferred_element_type=f32)

    @pl.when(k == pl.num_programs(1) - 1)
    def _():
        B = n_batch

        # folded bn bias + SiLU (bn2 act)
        y = yacc_ref[...] + benc_ref[...]
        y = y * jax.nn.sigmoid(y)

        # 2) AdaptiveAvgPool2d(1) as one lane-dense matmul (time-major rows).
        pooled = jnp.dot(pool_ref[...], y.astype(bf16),
                         preferred_element_type=f32)          # (T*B, FEATS)

        # 3) Fused fwd|bwd LSTM input projection: one (T*B,128)@(128,512) dot.
        gx = (jnp.dot(pooled.astype(bf16), wi_ref[...],
                      preferred_element_type=f32) + bi_ref[...])   # (T*B, 8H)
        gx_f = gx[:, :4 * hid]
        gx_b = gx[:, 4 * hid:]

        whh = whh_ref[...]                                    # (2H, 4H) f32
        zz = jnp.zeros((B, hid), f32)
        h = jnp.zeros((2 * B, hid), f32)
        c = jnp.zeros((2 * B, hid), f32)
        hf_states = [None] * seqlen
        hb_states = [None] * seqlen

        # Fully unrolled recurrence; both directions share ONE matmul per step
        # via a block-diagonal hidden-state operand. Gate order is (i, f, o, g)
        # (permuted at param-prep) so sigmoid covers 3H and tanh covers H.
        for s in range(seqlen):
            tf = s
            tb = seqlen - 1 - s
            g_in = jnp.concatenate(
                [gx_f[tf * B:(tf + 1) * B, :],
                 gx_b[tb * B:(tb + 1) * B, :]], axis=0)       # (2B, 4H)
            if s == 0:
                gates = g_in                                  # h0 == 0
            else:
                x_blk = jnp.concatenate(
                    [jnp.concatenate([h[:B], zz], axis=1),
                     jnp.concatenate([zz, h[B:]], axis=1)],
                    axis=0)                                   # (2B, 2H)
                gates = g_in + jnp.dot(x_blk, whh,
                                       preferred_element_type=f32)
            sig = jax.nn.sigmoid(gates[:, :3 * hid])
            g_t = jnp.tanh(gates[:, 3 * hid:])
            i_g = sig[:, 0:hid]
            f_g = sig[:, hid:2 * hid]
            o_g = sig[:, 2 * hid:3 * hid]
            c = f_g * c + i_g * g_t
            h = o_g * jnp.tanh(c)
            hf_states[tf] = h[:B]
            hb_states[tb] = h[B:]

        # Hidden states stay in vregs; one lane-dense (T*B, 2H) value.
        lstm_out = jnp.concatenate(
            [jnp.concatenate([hf_states[t], hb_states[t]], axis=1)
             for t in range(seqlen)], axis=0)                 # (T*B, 2H)

        # 4) head Linear (dropout identity at inference), padded to 128 lanes.
        logits = (jnp.dot(lstm_out.astype(bf16), whead_ref[...],
                          preferred_element_type=f32) + bhead_ref[...])
        out_ref[...] = logits.astype(out_ref.dtype)


def fused_forward(patches_bf16, prep, *, n_batch_blocks=NB, k_tiles=KT):
    n_rows = BS * NSLICE
    bpb = BS // n_batch_blocks
    rows_p = bpb * NSLICE * P            # encoder-matmul rows per batch block
    kblk = KIN // k_tiles

    kern = functools.partial(_fused_forward_kernel,
                             n_batch=bpb, seqlen=NSLICE, hid=HID)

    def full(shape):
        nd = len(shape)
        return pl.BlockSpec(shape, lambda nb, k, nd=nd: (0,) * nd)

    return pl.pallas_call(
        kern,
        out_shape=jax.ShapeDtypeStruct((n_rows, HEAD_PAD), jnp.float32),
        grid=(n_batch_blocks, k_tiles),
        in_specs=[
            pl.BlockSpec((rows_p, kblk), lambda nb, k: (nb, k)),   # patches
            pl.BlockSpec((kblk, FEATS), lambda nb, k: (k, 0)),     # w_enc
            full(prep["b_enc"].shape),
            full(prep["pool_mat"].shape),
            full(prep["wi_fused"].shape),
            full(prep["bi_fused"].shape),
            full(prep["whh_fused"].shape),
            full(prep["w_head"].shape),
            full(prep["b_head"].shape),
        ],
        out_specs=pl.BlockSpec((bpb * NSLICE, HEAD_PAD), lambda nb, k: (nb, 0)),
        scratch_shapes=[pltpu.VMEM((rows_p, FEATS), jnp.float32)],
        compiler_params=pltpu.CompilerParams(
            dimension_semantics=("parallel", "arbitrary")),
    )(patches_bf16, prep["w_enc"], prep["b_enc"], prep["pool_mat"],
      prep["wi_fused"], prep["bi_fused"], prep["whh_fused"],
      prep["w_head"], prep["b_head"])


# ------------------------------ glue / wrapper --------------------------------
def patchify(x_img):
    # (N, C, H, W) NCHW -> non-overlapping PATCHxPATCH patches, channel-last rows
    n, c, h, w = x_img.shape
    xp = x_img.reshape(n, c, h // PATCH, PATCH, w // PATCH, PATCH)
    xp = xp.transpose(0, 2, 4, 1, 3, 5)
    return xp.reshape(n * (h // PATCH) * (w // PATCH), c * PATCH * PATCH)


def init_params(key):
    ks = jax.random.split(key, 16)

    def rn(k, shape, scale=0.02):
        return (scale * jax.random.normal(k, shape)).astype(jnp.float32)

    p = {}
    # stand-in encoder (patch-embed conv, stride 32)
    p["w_patch"] = rn(ks[0], (KIN, C_ENC))
    p["b_patch"] = rn(ks[1], (1, C_ENC))
    # conv_head: 1x1 conv, bias=False (timm)
    p["w_convhead"] = rn(ks[2], (C_ENC, FEATS))
    # bn2 (BatchNormAct2d, eval mode)
    p["bn_gamma"] = 1.0 + rn(ks[3], (FEATS,))
    p["bn_beta"] = rn(ks[4], (FEATS,))
    p["bn_mean"] = rn(ks[5], (FEATS,))
    p["bn_var"] = jnp.abs(1.0 + rn(ks[6], (FEATS,)))
    # bidirectional LSTM (weights stored transposed: (in, 4H) / (H, 4H);
    # bias = b_ih + b_hh folded into one (1, 4H) vector per direction)
    p["lstm_wif"] = rn(ks[7], (FEATS, 4 * HID), 0.05)
    p["lstm_whf"] = rn(ks[8], (HID, 4 * HID), 0.05)
    p["lstm_bf"] = rn(ks[9], (1, 4 * HID), 0.05)
    p["lstm_wib"] = rn(ks[10], (FEATS, 4 * HID), 0.05)
    p["lstm_whb"] = rn(ks[11], (HID, 4 * HID), 0.05)
    p["lstm_bb"] = rn(ks[12], (1, 4 * HID), 0.05)
    # head: Dropout(0.1) [identity at inference] + Linear(FEATS, NCLS)
    p["w_head"] = rn(ks[13], (FEATS, NCLS), 0.05)
    p["b_head"] = rn(ks[14], (1, NCLS), 0.05)
    return p


def prepare_params(p, n_batch_block=BPB):
    """One-time param prep: fold encoder/conv_head/bn, fuse+permute LSTM weights."""
    scale = p["bn_gamma"] / jnp.sqrt(p["bn_var"] + BN_EPS)
    bias = p["bn_beta"] - p["bn_mean"] * scale
    # Folding is exact: no nonlinearity between patch-embed, conv_head, and
    # eval-mode BN (valid only for this linear stand-in encoder).
    w_enc = jnp.dot(p["w_patch"], p["w_convhead"], precision=PREC) * scale[None, :]
    b_enc = (jnp.dot(p["b_patch"], p["w_convhead"], precision=PREC) * scale[None, :]
             + bias[None, :])

    # PyTorch gate order (i,f,g,o) -> (i,f,o,g): sigmoid on first 3H, tanh on last H.
    def perm(w):
        i, f, g, o = jnp.split(w, 4, axis=-1)
        return jnp.concatenate([i, f, o, g], axis=-1)

    wi_fused = jnp.concatenate([perm(p["lstm_wif"]), perm(p["lstm_wib"])], axis=1)
    bi_fused = jnp.concatenate([perm(p["lstm_bf"]), perm(p["lstm_bb"])], axis=1)
    whh_fused = jnp.concatenate([perm(p["lstm_whf"]), perm(p["lstm_whb"])], axis=0)

    # Per-batch-block pooling matrix (time-major rows within a block):
    # row t*B + b averages the P spatial positions of local image (b, t).
    bpb = n_batch_block
    pool_np = np.zeros((NSLICE * bpb, bpb * NSLICE * P), np.float32)
    for b in range(bpb):
        for t in range(NSLICE):
            img = b * NSLICE + t
            pool_np[t * bpb + b, img * P:(img + 1) * P] = 1.0 / P

    # Head zero-padded to a lane-dense 128-wide output.
    w_head_pad = jnp.zeros((FEATS, HEAD_PAD), jnp.float32).at[:, :NCLS].set(p["w_head"])
    b_head_pad = jnp.zeros((1, HEAD_PAD), jnp.float32).at[:, :NCLS].set(p["b_head"])

    return {
        "w_enc": w_enc.astype(jnp.bfloat16),
        "b_enc": b_enc.astype(jnp.float32),
        "pool_mat": jnp.asarray(pool_np).astype(jnp.bfloat16),
        "wi_fused": wi_fused.astype(jnp.bfloat16),
        "bi_fused": bi_fused.astype(jnp.float32),
        "whh_fused": whh_fused.astype(jnp.float32),   # recurrence kept f32
        "w_head": w_head_pad.astype(jnp.bfloat16),
        "b_head": b_head_pad.astype(jnp.float32),
    }


@jax.jit
def forward(prep, x):
    bs, n_slice, c, hh, ww = x.shape
    # cast BEFORE the patchify transpose (halves the XLA transpose's HBM traffic)
    x2 = x.reshape(bs * n_slice, c, hh, ww).astype(jnp.bfloat16)
    patches = patchify(x2)                                   # (bs*n*P, KIN) bf16
    out = fused_forward(patches, prep)                       # (bs*n, 128) f32
    # time-major-within-block rows -> (bs, n_slice, NCLS)
    out = out.reshape(NB, n_slice, BPB, HEAD_PAD)
    out = out.transpose(0, 2, 1, 3).reshape(bs, n_slice, HEAD_PAD)
    return out[..., :NCLS]


# ------------------------------ pure-JAX reference ----------------------------
def reference(params, x):
    bs, n_slice, c, hh, ww = x.shape
    x2 = x.reshape(bs * n_slice, c, hh, ww)
    patches = patchify(x2)
    enc = (jnp.dot(patches, params["w_patch"], precision=PREC)
           + params["b_patch"]).reshape(bs * n_slice, P, C_ENC)
    scale = params["bn_gamma"] / jnp.sqrt(params["bn_var"] + BN_EPS)
    bias = params["bn_beta"] - params["bn_mean"] * scale
    y = jnp.dot(enc, params["w_convhead"], precision=PREC)
    y = y * scale + bias
    y = y * jax.nn.sigmoid(y)
    pooled = y.mean(axis=1)
    seq = pooled.reshape(bs, n_slice, FEATS)

    def run_dir(seq_b, wih, whh, b):
        def step(carry, x_t):
            h, c_ = carry
            gates = (jnp.dot(x_t, wih, precision=PREC)
                     + jnp.dot(h, whh, precision=PREC) + b[0])
            i = jax.nn.sigmoid(gates[0:HID])
            f = jax.nn.sigmoid(gates[HID:2 * HID])
            g = jnp.tanh(gates[2 * HID:3 * HID])
            o = jax.nn.sigmoid(gates[3 * HID:4 * HID])
            c2 = f * c_ + i * g
            h2 = o * jnp.tanh(c2)
            return (h2, c2), h2
        init = (jnp.zeros((HID,), jnp.float32), jnp.zeros((HID,), jnp.float32))
        _, hs = lax.scan(step, init, seq_b)
        return hs

    outs = []
    for bi in range(bs):
        f_out = run_dir(seq[bi], params["lstm_wif"], params["lstm_whf"],
                        params["lstm_bf"])
        b_out = run_dir(seq[bi][::-1], params["lstm_wib"], params["lstm_whb"],
                        params["lstm_bb"])[::-1]
        outs.append(jnp.concatenate([f_out, b_out], axis=-1))
    lstm_out = jnp.stack(outs)
    flat = lstm_out.reshape(bs * n_slice, 2 * HID)
    logits = jnp.dot(flat, params["w_head"], precision=PREC) + params["b_head"]
    return logits.reshape(bs, n_slice, NCLS)


# ----------------------------------- main -------------------------------------
if __name__ == "__main__":
    key = jax.random.PRNGKey(0)
    k_param, k_x = jax.random.split(key)
    params = init_params(k_param)
    prep = prepare_params(params)
    x = jax.random.normal(
        k_x, (BS, NSLICE, IN_CHANS, IMG, IMG), dtype=jnp.float32)

    out = jax.block_until_ready(forward(prep, x))
    ref = jax.block_until_ready(reference(params, x))

    assert out.shape == (BS, NSLICE, NCLS), out.shape
    err = float(jnp.max(jnp.abs(out - ref)))
    assert jnp.allclose(out, ref, atol=1e-2, rtol=1e-2), err
    print("KERNEL_OK")
</pallas_src>

<mosaic_0001>
module attributes {stable_mosaic.version = 11 : i64} {
  func.func @_fused_forward_kernel(%arg0: i32, %arg1: i32, %arg2: memref<64x1536xbf16, #tpu.memory_space<vmem>>, %arg3: memref<1536x128xbf16, #tpu.memory_space<vmem>>, %arg4: memref<1x128xf32, #tpu.memory_space<vmem>>, %arg5: memref<16x64xbf16, #tpu.memory_space<vmem>>, %arg6: memref<128x512xbf16, #tpu.memory_space<vmem>>, %arg7: memref<1x512xf32, #tpu.memory_space<vmem>>, %arg8: memref<128x256xf32, #tpu.memory_space<vmem>>, %arg9: memref<128x128xbf16, #tpu.memory_space<vmem>>, %arg10: memref<1x128xf32, #tpu.memory_space<vmem>>, %arg11: memref<16x128xf32, #tpu.memory_space<vmem>>, %arg12: memref<64x128xf32, #tpu.memory_space<vmem>>) attributes {dimension_semantics = [#tpu.dimension_semantics<parallel>, #tpu.dimension_semantics<arbitrary>], iteration_bounds = array<i64: 1, 2>, scalar_prefetch = 0 : i64, scratch_operands = 1 : i64, tpu.core_type = #tpu.core_type<tc>, window_params = [{transform_indices = @transform_0, window_bounds = array<i64: 64, 1536>}, {transform_indices = @transform_1, window_bounds = array<i64: 1536, 128>}, {pipeline_mode = #tpu.pipeline_mode<synchronous>, transform_indices = @transform_2, window_bounds = array<i64: 1, 128>}, {pipeline_mode = #tpu.pipeline_mode<synchronous>, transform_indices = @transform_3, window_bounds = array<i64: 16, 64>}, {pipeline_mode = #tpu.pipeline_mode<synchronous>, transform_indices = @transform_4, window_bounds = array<i64: 128, 512>}, {pipeline_mode = #tpu.pipeline_mode<synchronous>, transform_indices = @transform_5, window_bounds = array<i64: 1, 512>}, {pipeline_mode = #tpu.pipeline_mode<synchronous>, transform_indices = @transform_6, window_bounds = array<i64: 128, 256>}, {pipeline_mode = #tpu.pipeline_mode<synchronous>, transform_indices = @transform_7, window_bounds = array<i64: 128, 128>}, {pipeline_mode = #tpu.pipeline_mode<synchronous>, transform_indices = @transform_8, window_bounds = array<i64: 1, 128>}, {transform_indices = @transform_9, window_bounds = array<i64: 16, 128>}]} {
    %c0_i32 = arith.constant 0 : i32
    %0 = arith.cmpi eq, %arg1, %c0_i32 : i32
    %1 = arith.extui %0 : i1 to i32
    %c0_i32_0 = arith.constant 0 : i32
    %2 = arith.cmpi ne, %1, %c0_i32_0 : i32
    scf.if %2 {
      %cst_9 = arith.constant 0.000000e+00 : f32
      %12 = vector.broadcast %cst_9 : f32 to vector<64x128xf32>
      %c0_10 = arith.constant 0 : index
      %c0_11 = arith.constant 0 : index
      %13 = vector.load %arg12[%c0_10, %c0_11] : memref<64x128xf32, #tpu.memory_space<vmem>>, vector<64x128xf32>
      tpu.vector_store %arg12[%c0_10, %c0_11], %12 {strides = array<i32>} : memref<64x128xf32, #tpu.memory_space<vmem>>, vector<64x128xf32>,
    } else {
    }
    %c0 = arith.constant 0 : index
    %c0_1 = arith.constant 0 : index
    %3 = vector.load %arg12[%c0, %c0_1] : memref<64x128xf32, #tpu.memory_space<vmem>>, vector<64x128xf32>
    %c0_2 = arith.constant 0 : index
    %c0_3 = arith.constant 0 : index
    %4 = vector.load %arg2[%c0_2, %c0_3] : memref<64x1536xbf16, #tpu.memory_space<vmem>>, vector<64x1536xbf16>
    %c0_4 = arith.constant 0 : index
    %c0_5 = arith.constant 0 : index
    %5 = vector.load %arg3[%c0_4, %c0_5] : memref<1536x128xbf16, #tpu.memory_space<vmem>>, vector<1536x128xbf16>
    %cst = arith.constant dense<0.000000e+00> : vector<64x128xf32>
    %6 = tpu.matmul %4, %5, %cst {dimension_numbers = #tpu.dot_dimension_numbers<[1], [0], [0], [1], [0, 0, 1, 1], [], []>} : vector<64x1536xbf16>, vector<1536x128xbf16>, vector<64x128xf32> -> vector<64x128xf32>
    %7 = arith.addf %3, %6 : vector<64x128xf32>
    %c0_6 = arith.constant 0 : index
    %c0_7 = arith.constant 0 : index
    %8 = vector.load %arg12[%c0_6, %c0_7] : memref<64x128xf32, #tpu.memory_space<vmem>>, vector<64x128xf32>
    tpu.vector_store %arg12[%c0_6, %c0_7], %7 {strides = array<i32>} : memref<64x128xf32, #tpu.memory_space<vmem>>, vector<64x128xf32>,
    %c1_i32 = arith.constant 1 : i32
    %9 = arith.cmpi eq, %arg1, %c1_i32 : i32
    %10 = arith.extui %9 : i1 to i32
    %c0_i32_8 = arith.constant 0 : i32
    %11 = arith.cmpi ne, %10, %c0_i32_8 : i32
    scf.if %11 {
      %c0_9 = arith.constant 0 : index
      %c0_10 = arith.constant 0 : index
      %12 = vector.load %arg12[%c0_9, %c0_10] : memref<64x128xf32, #tpu.memory_space<vmem>>, vector<64x128xf32>
      %c0_11 = arith.constant 0 : index
      %c0_12 = arith.constant 0 : index
      %13 = vector.load %arg4[%c0_11, %c0_12] : memref<1x128xf32, #tpu.memory_space<vmem>>, vector<1x128xf32>
      %14 = vector.broadcast %13 : vector<1x128xf32> to vector<64x128xf32>
      %15 = arith.addf %12, %14 : vector<64x128xf32>
      %16 = arith.negf %15 : vector<64x128xf32>
      %17 = math.exp %16 : vector<64x128xf32>
      %cst_13 = arith.constant 1.000000e+00 : f32
      %18 = vector.broadcast %cst_13 : f32 to vector<64x128xf32>
      %19 = arith.addf %18, %17 : vector<64x128xf32>
      %20 = arith.divf %18, %19 : vector<64x128xf32>
      %21 = arith.mulf %15, %20 : vector<64x128xf32>
      %c0_14 = arith.constant 0 : index
      %c0_15 = arith.constant 0 : index
      %22 = vector.load %arg5[%c0_14, %c0_15] : memref<16x64xbf16, #tpu.memory_space<vmem>>, vector<16x64xbf16>
      %23 = arith.truncf %21 : vector<64x128xf32> to vector<64x128xbf16>
      %cst_16 = arith.constant dense<0.000000e+00> : vector<16x128xf32>
      %24 = tpu.matmul %22, %23, %cst_16 {dimension_numbers = #tpu.dot_dimension_numbers<[1], [0], [0], [1], [0, 0, 1, 1], [], []>} : vector<16x64xbf16>, vector<64x128xbf16>, vector<16x128xf32> -> vector<16x128xf32>
      %25 = arith.truncf %24 : vector<16x128xf32> to vector<16x128xbf16>
      %c0_17 = arith.constant 0 : index
      %c0_18 = arith.constant 0 : index
      %26 = vector.load %arg6[%c0_17, %c0_18] : memref<128x512xbf16, #tpu.memory_space<vmem>>, vector<128x512xbf16>
      %cst_19 = arith.constant dense<0.000000e+00> : vector<16x512xf32>
      %27 = tpu.matmul %25, %26, %cst_19 {dimension_numbers = #tpu.dot_dimension_numbers<[1], [0], [0], [1], [0, 0, 1, 1], [], []>} : vector<16x128xbf16>, vector<128x512xbf16>, vector<16x512xf32> -> vector<16x512xf32>
      %c0_20 = arith.constant 0 : index
      %c0_21 = arith.constant 0 : index
      %28 = vector.load %arg7[%c0_20, %c0_21] : memref<1x512xf32, #tpu.memory_space<vmem>>, vector<1x512xf32>
      %29 = vector.broadcast %28 : vector<1x512xf32> to vector<16x512xf32>
      %30 = arith.addf %27, %29 : vector<16x512xf32>
      %31 = vector.extract_strided_slice %30 {offsets = [0, 0], sizes = [16, 256], strides = [1, 1]} : vector<16x512xf32> to vector<16x256xf32>
      %32 = vector.extract_strided_slice %30 {offsets = [0, 256], sizes = [16, 256], strides = [1, 1]} : vector<16x512xf32> to vector<16x256xf32>
      %c0_22 = arith.constant 0 : index
      %c0_23 = arith.constant 0 : index
      %33 = vector.load %arg8[%c0_22, %c0_23] : memref<128x256xf32, #tpu.memory_space<vmem>>, vector<128x256xf32>
      %cst_24 = arith.constant 0.000000e+00 : f32
      %34 = vector.broadcast %cst_24 : f32 to vector<2x64xf32>
      %cst_25 = arith.constant 0.000000e+00 : f32
      %35 = vector.broadcast %cst_25 : f32 to vector<4x64xf32>
      %36 = vector.extract_strided_slice %31 {offsets = [0, 0], sizes = [2, 256], strides = [1, 1]} : vector<16x256xf32> to vector<2x256xf32>
      %37 = vector.extract_strided_slice %32 {offsets = [14, 0], sizes = [2, 256], strides = [1, 1]} : vector<16x256xf32> to vector<2x256xf32>
      %38 = tpu.concatenate %36, %37 in 0 : vector<2x256xf32>, vector<2x256xf32> -> vector<4x256xf32>
      %39 = vector.extract_strided_slice %38 {offsets = [0, 0], sizes = [4, 192], strides = [1, 1]} : vector<4x256xf32> to vector<4x192xf32>
      %40 = arith.negf %39 : vector<4x192xf32>
      %41 = math.exp %40 : vector<4x192xf32>
      %cst_26 = arith.constant 1.000000e+00 : f32
      %42 = vector.broadcast %cst_26 : f32 to vector<4x192xf32>
      %43 = arith.addf %42, %41 : vector<4x192xf32>
      %44 = arith.divf %42, %43 : vector<4x192xf32>
      %45 = vector.extract_strided_slice %38 {offsets = [0, 192], sizes = [4, 64], strides = [1, 1]} : vector<4x256xf32> to vector<4x64xf32>
      %46 = math.tanh %45 : vector<4x64xf32>
      %47 = vector.extract_strided_slice %44 {offsets = [0, 0], sizes = [4, 64], strides = [1, 1]} : vector<4x192xf32> to vector<4x64xf32>
      %48 = vector.extract_strided_slice %44 {offsets = [0, 64], sizes = [4, 64], strides = [1, 1]} : vector<4x192xf32> to vector<4x64xf32>
      %49 = vector.extract_strided_slice %44 {offsets = [0, 128], sizes = [4, 64], strides = [1, 1]} : vector<4x192xf32> to vector<4x64xf32>
      %50 = arith.mulf %48, %35 : vector<4x64xf32>
      %51 = arith.mulf %47, %46 : vector<4x64xf32>
      %52 = arith.addf %50, %51 : vector<4x64xf32>
      %53 = math.tanh %52 : vector<4x64xf32>
      %54 = arith.mulf %49, %53 : vector<4x64xf32>
      %55 = vector.extract_strided_slice %54 {offsets = [0, 0], sizes = [2, 64], strides = [1, 1]} : vector<4x64xf32> to vector<2x64xf32>
      %56 = vector.extract_strided_slice %54 {offsets = [2, 0], sizes = [2, 64], strides = [1, 1]} : vector<4x64xf32> to vector<2x64xf32>
      %57 = vector.extract_strided_slice %31 {offsets = [2, 0], sizes = [2, 256], strides = [1, 1]} : vector<16x256xf32> to vector<2x256xf32>
      %58 = vector.extract_strided_slice %32 {offsets = [12, 0], sizes = [2, 256], strides = [1, 1]} : vector<16x256xf32> to vector<2x256xf32>
      %59 = tpu.concatenate %57, %58 in 0 : vector<2x256xf32>, vector<2x256xf32> -> vector<4x256xf32>
      %60 = vector.extract_strided_slice %54 {offsets = [0, 0], sizes = [2, 64], strides = [1, 1]} : vector<4x64xf32> to vector<2x64xf32>
      %61 = tpu.concatenate %60, %34 in 1 : vector<2x64xf32>, vector<2x64xf32> -> vector<2x128xf32>
      %62 = vector.extract_strided_slice %54 {offsets = [2, 0], sizes = [2, 64], strides = [1, 1]} : vector<4x64xf32> to vector<2x64xf32>
      %63 = tpu.concatenate %34, %62 in 1 : vector<2x64xf32>, vector<2x64xf32> -> vector<2x128xf32>
      %64 = tpu.concatenate %61, %63 in 0 : vector<2x128xf32>, vector<2x128xf32> -> vector<4x128xf32>
      %cst_27 = arith.constant dense<0.000000e+00> : vector<4x256xf32>
      %65 = tpu.matmul %64, %33, %cst_27 {dimension_numbers = #tpu.dot_dimension_numbers<[1], [0], [0], [1], [0, 0, 1, 1], [], []>} : vector<4x128xf32>, vector<128x256xf32>, vector<4x256xf32> -> vector<4x256xf32>
      %66 = arith.addf %59, %65 : vector<4x256xf32>
      %67 = vector.extract_strided_slice %66 {offsets = [0, 0], sizes = [4, 192], strides = [1, 1]} : vector<4x256xf32> to vector<4x192xf32>
      %68 = arith.negf %67 : vector<4x192xf32>
      %69 = math.exp %68 : vector<4x192xf32>
      %cst_28 = arith.constant 1.000000e+00 : f32
      %70 = vector.broadcast %cst_28 : f32 to vector<4x192xf32>
      %71 = arith.addf %70, %69 : vector<4x192xf32>
      %72 = arith.divf %70, %71 : vector<4x192xf32>
      %73 = vector.extract_strided_slice %66 {offsets = [0, 192], sizes = [4, 64], strides = [1, 1]} : vector<4x256xf32> to vector<4x64xf32>
      %74 = math.tanh %73 : vector<4x64xf32>
      %75 = vector.extract_strided_slice %72 {offsets = [0, 0], sizes = [4, 64], strides = [1, 1]} : vector<4x192xf32> to vector<4x64xf32>
      %76 = vector.extract_strided_slice %72 {offsets = [0, 64], sizes = [4, 64], strides = [1, 1]} : vector<4x192xf32> to vector<4x64xf32>
      %77 = vector.extract_strided_slice %72 {offsets = [0, 128], sizes = [4, 64], strides = [1, 1]} : vector<4x192xf32> to vector<4x64xf32>
      %78 = arith.mulf %76, %52 : vector<4x64xf32>
      %79 = arith.mulf %75, %74 : vector<4x64xf32>
      %80 = arith.addf %78, %79 : vector<4x64xf32>
      %81 = math.tanh %80 : vector<4x64xf32>
      %82 = arith.mulf %77, %81 : vector<4x64xf32>
      %83 = vector.extract_strided_slice %82 {offsets = [0, 0], sizes = [2, 64], strides = [1, 1]} : vector<4x64xf32> to vector<2x64xf32>
      %84 = vector.extract_strided_slice %82 {offsets = [2, 0], sizes = [2, 64], strides = [1, 1]} : vector<4x64xf32> to vector<2x64xf32>
      %85 = vector.extract_strided_slice %31 {offsets = [4, 0], sizes = [2, 256], strides = [1, 1]} : vector<16x256xf32> to vector<2x256xf32>
      %86 = vector.extract_strided_slice %32 {offsets = [10, 0], sizes = [2, 256], strides = [1, 1]} : vector<16x256xf32> to vector<2x256xf32>
      %87 = tpu.concatenate %85, %86 in 0 : vector<2x256xf32>, vector<2x256xf32> -> vector<4x256xf32>
      %88 = vector.extract_strided_slice %82 {offsets = [0, 0], sizes = [2, 64], strides = [1, 1]} : vector<4x64xf32> to vector<2x64xf32>
      %89 = tpu.concatenate %88, %34 in 1 : vector<2x64xf32>, vector<2x64xf32> -> vector<2x128xf32>
      %90 = vector.extract_strided_slice %82 {offsets = [2, 0], sizes = [2, 64], strides = [1, 1]} : vector<4x64xf32> to vector<2x64xf32>
      %91 = tpu.concatenate %34, %90 in 1 : vector<2x64xf32>, vector<2x64xf32> -> vector<2x128xf32>
      %92 = tpu.concatenate %89, %91 in 0 : vector<2x128xf32>, vector<2x128xf32> -> vector<4x128xf32>
      %cst_29 = arith.constant dense<0.000000e+00> : vector<4x256xf32>
      %93 = tpu.matmul %92, %33, %cst_29 {dimension_numbers = #tpu.dot_dimension_numbers<[1], [0], [0], [1], [0, 0, 1, 1], [], []>} : vector<4x128xf32>, vector<128x256xf32>, vector<4x256xf32> -> vector<4x256xf32>
      %94 = arith.addf %87, %93 : vector<4x256xf32>
      %95 = vector.extract_strided_slice %94 {offsets = [0, 0], sizes = [4, 192], strides = [1, 1]} : vector<4x256xf32> to vector<4x192xf32>
      %96 = arith.negf %95 : vector<4x192xf32>
      %97 = math.exp %96 : vector<4x192xf32>
      %cst_30 = arith.constant 1.000000e+00 : f32
      %98 = vector.broadcast %cst_30 : f32 to vector<4x192xf32>
      %99 = arith.addf %98, %97 : vector<4x192xf32>
      %100 = arith.divf %98, %99 : vector<4x192xf32>
      %101 = vector.extract_strided_slice %94 {offsets = [0, 192], sizes = [4, 64], strides = [1, 1]} : vector<4x256xf32> to vector<4x64xf32>
      %102 = math.tanh %101 : vector<4x64xf32>
      %103 = vector.extract_strided_slice %100 {offsets = [0, 0], sizes = [4, 64], strides = [1, 1]} : vector<4x192xf32> to vector<4x64xf32>
      %104 = vector.extract_strided_slice %100 {offsets = [0, 64], sizes = [4, 64], strides = [1, 1]} : vector<4x192xf32> to vector<4x64xf32>
      %105 = vector.extract_strided_slice %100 {offsets = [0, 128], sizes = [4, 64], strides = [1, 1]} : vector<4x192xf32> to vector<4x64xf32>
      %106 = arith.mulf %104, %80 : vector<4x64xf32>
      %107 = arith.mulf %103, %102 : vector<4x64xf32>
      %108 = arith.addf %106, %107 : vector<4x64xf32>
      %109 = math.tanh %108 : vector<4x64xf32>
      %110 = arith.mulf %105, %109 : vector<4x64xf32>
      %111 = vector.extract_strided_slice %110 {offsets = [0, 0], sizes = [2, 64], strides = [1, 1]} : vector<4x64xf32> to vector<2x64xf32>
      %112 = vector.extract_strided_slice %110 {offsets = [2, 0], sizes = [2, 64], strides = [1, 1]} : vector<4x64xf32> to vector<2x64xf32>
      %113 = vector.extract_strided_slice %31 {offsets = [6, 0], sizes = [2, 256], strides = [1, 1]} : vector<16x256xf32> to vector<2x256xf32>
      %114 = vector.extract_strided_slice %32 {offsets = [8, 0], sizes = [2, 256], strides = [1, 1]} : vector<16x256xf32> to vector<2x256xf32>
      %115 = tpu.concatenate %113, %114 in 0 : vector<2x256xf32>, vector<2x256xf32> -> vector<4x256xf32>
      %116 = vector.extract_strided_slice %110 {offsets = [0, 0], sizes = [2, 64], strides = [1, 1]} : vector<4x64xf32> to vector<2x64xf32>
      %117 = tpu.concatenate %116, %34 in 1 : vector<2x64xf32>, vector<2x64xf32> -> vector<2x128xf32>
      %118 = vector.extract_strided_slice %110 {offsets = [2, 0], sizes = [2, 64], strides = [1, 1]} : vector<4x64xf32> to vector<2x64xf32>
      %119 = tpu.concatenate %34, %118 in 1 : vector<2x64xf32>, vector<2x64xf32> -> vector<2x128xf32>
      %120 = tpu.concatenate %117, %119 in 0 : vector<2x128xf32>, vector<2x128xf32> -> vector<4x128xf32>
      %cst_31 = arith.constant dense<0.000000e+00> : vector<4x256xf32>
      %121 = tpu.matmul %120, %33, %cst_31 {dimension_numbers = #tpu.dot_dimension_numbers<[1], [0], [0], [1], [0, 0, 1, 1], [], []>} : vector<4x128xf32>, vector<128x256xf32>, vector<4x256xf32> -> vector<4x256xf32>
      %122 = arith.addf %115, %121 : vector<4x256xf32>
      %123 = vector.extract_strided_slice %122 {offsets = [0, 0], sizes = [4, 192], strides = [1, 1]} : vector<4x256xf32> to vector<4x192xf32>
      %124 = arith.negf %123 : vector<4x192xf32>
      %125 = math.exp %124 : vector<4x192xf32>
      %cst_32 = arith.constant 1.000000e+00 : f32
      %126 = vector.broadcast %cst_32 : f32 to vector<4x192xf32>
      %127 = arith.addf %126, %125 : vector<4x192xf32>
      %128 = arith.divf %126, %127 : vector<4x192xf32>
      %129 = vector.extract_strided_slice %122 {offsets = [0, 192], sizes = [4, 64], strides = [1, 1]} : vector<4x256xf32> to vector<4x64xf32>
      %130 = math.tanh %129 : vector<4x64xf32>
      %131 = vector.extract_strided_slice %128 {offsets = [0, 0], sizes = [4, 64], strides = [1, 1]} : vector<4x192xf32> to vector<4x64xf32>
      %132 = vector.extract_strided_slice %128 {offsets = [0, 64], sizes = [4, 64], strides = [1, 1]} : vector<4x192xf32> to vector<4x64xf32>
      %133 = vector.extract_strided_slice %128 {offsets = [0, 128], sizes = [4, 64], strides = [1, 1]} : vector<4x192xf32> to vector<4x64xf32>
      %134 = arith.mulf %132, %108 : vector<4x64xf32>
      %135 = arith.mulf %131, %130 : vector<4x64xf32>
      %136 = arith.addf %134, %135 : vector<4x64xf32>
      %137 = math.tanh %136 : vector<4x64xf32>
      %138 = arith.mulf %133, %137 : vector<4x64xf32>
      %139 = vector.extract_strided_slice %138 {offsets = [0, 0], sizes = [2, 64], strides = [1, 1]} : vector<4x64xf32> to vector<2x64xf32>
      %140 = vector.extract_strided_slice %138 {offsets = [2, 0], sizes = [2, 64], strides = [1, 1]} : vector<4x64xf32> to vector<2x64xf32>
      %141 = vector.extract_strided_slice %31 {offsets = [8, 0], sizes = [2, 256], strides = [1, 1]} : vector<16x256xf32> to vector<2x256xf32>
      %142 = vector.extract_strided_slice %32 {offsets = [6, 0], sizes = [2, 256], strides = [1, 1]} : vector<16x256xf32> to vector<2x256xf32>
      %143 = tpu.concatenate %141, %142 in 0 : vector<2x256xf32>, vector<2x256xf32> -> vector<4x256xf32>
      %144 = vector.extract_strided_slice %138 {offsets = [0, 0], sizes = [2, 64], strides = [1, 1]} : vector<4x64xf32> to vector<2x64xf32>
      %145 = tpu.concatenate %144, %34 in 1 : vector<2x64xf32>, vector<2x64xf32> -> vector<2x128xf32>
      %146 = vector.extract_strided_slice %138 {offsets = [2, 0], sizes = [2, 64], strides = [1, 1]} : vector<4x64xf32> to vector<2x64xf32>
      %147 = tpu.concatenate %34, %146 in 1 : vector<2x64xf32>, vector<2x64xf32> -> vector<2x128xf32>
      %148 = tpu.concatenate %145, %147 in 0 : vector<2x128xf32>, vector<2x128xf32> -> vector<4x128xf32>
      %cst_33 = arith.constant dense<0.000000e+00> : vector<4x256xf32>
      %149 = tpu.matmul %148, %33, %cst_33 {dimension_numbers = #tpu.dot_dimension_numbers<[1], [0], [0], [1], [0, 0, 1, 1], [], []>} : vector<4x128xf32>, vector<128x256xf32>, vector<4x256xf32> -> vector<4x256xf32>
      %150 = arith.addf %143, %149 : vector<4x256xf32>
      %151 = vector.extract_strided_slice %150 {offsets = [0, 0], sizes = [4, 192], strides = [1, 1]} : vector<4x256xf32> to vector<4x192xf32>
      %152 = arith.negf %151 : vector<4x192xf32>
      %153 = math.exp %152 : vector<4x192xf32>
      %cst_34 = arith.constant 1.000000e+00 : f32
      %154 = vector.broadcast %cst_34 : f32 to vector<4x192xf32>
      %155 = arith.addf %154, %153 : vector<4x192xf32>
      %156 = arith.divf %154, %155 : vector<4x192xf32>
      %157 = vector.extract_strided_slice %150 {offsets = [0, 192], sizes = [4, 64], strides = [1, 1]} : vector<4x256xf32> to vector<4x64xf32>
      %158 = math.tanh %157 : vector<4x64xf32>
      %159 = vector.extract_strided_slice %156 {offsets = [0, 0], sizes = [4, 64], strides = [1, 1]} : vector<4x192xf32> to vector<4x64xf32>
      %160 = vector.extract_strided_slice %156 {offsets = [0, 64], sizes = [4, 64], strides = [1, 1]} : vector<4x192xf32> to vector<4x64xf32>
      %161 = vector.extract_strided_slice %156 {offsets = [0, 128], sizes = [4, 64], strides = [1, 1]} : vector<4x192xf32> to vector<4x64xf32>
      %162 = arith.mulf %160, %136 : vector<4x64xf32>
      %163 = arith.mulf %159, %158 : vector<4x64xf32>
      %164 = arith.addf %162, %163 : vector<4x64xf32>
      %165 = math.tanh %164 : vector<4x64xf32>
      %166 = arith.mulf %161, %165 : vector<4x64xf32>
      %167 = vector.extract_strided_slice %166 {offsets = [0, 0], sizes = [2, 64], strides = [1, 1]} : vector<4x64xf32> to vector<2x64xf32>
      %168 = vector.extract_strided_slice %166 {offsets = [2, 0], sizes = [2, 64], strides = [1, 1]} : vector<4x64xf32> to vector<2x64xf32>
      %169 = vector.extract_strided_slice %31 {offsets = [10, 0], sizes = [2, 256], strides = [1, 1]} : vector<16x256xf32> to vector<2x256xf32>
      %170 = vector.extract_strided_slice %32 {offsets = [4, 0], sizes = [2, 256], strides = [1, 1]} : vector<16x256xf32> to vector<2x256xf32>
      %171 = tpu.concatenate %169, %170 in 0 : vector<2x256xf32>, vector<2x256xf32> -> vector<4x256xf32>
      %172 = vector.extract_strided_slice %166 {offsets = [0, 0], sizes = [2, 64], strides = [1, 1]} : vector<4x64xf32> to vector<2x64xf32>
      %173 = tpu.concatenate %172, %34 in 1 : vector<2x64xf32>, vector<2x64xf32> -> vector<2x128xf32>
      %174 = vector.extract_strided_slice %166 {offsets = [2, 0], sizes = [2, 64], strides = [1, 1]} : vector<4x64xf32> to vector<2x64xf32>
      %175 = tpu.concatenate %34, %174 in 1 : vector<2x64xf32>, vector<2x64xf32> -> vector<2x128xf32>
      %176 = tpu.concatenate %173, %175 in 0 : vector<2x128xf32>, vector<2x128xf32> -> vector<4x128xf32>
      %cst_35 = arith.constant dense<0.000000e+00> : vector<4x256xf32>
      %177 = tpu.matmul %176, %33, %cst_35 {dimension_numbers = #tpu.dot_dimension_numbers<[1], [0], [0], [1], [0, 0, 1, 1], [], []>} : vector<4x128xf32>, vector<128x256xf32>, vector<4x256xf32> -> vector<4x256xf32>
      %178 = arith.addf %171, %177 : vector<4x256xf32>
      %179 = vector.extract_strided_slice %178 {offsets = [0, 0], sizes = [4, 192], strides = [1, 1]} : vector<4x256xf32> to vector<4x192xf32>
      %180 = arith.negf %179 : vector<4x192xf32>
      %181 = math.exp %180 : vector<4x192xf32>
      %cst_36 = arith.constant 1.000000e+00 : f32
      %182 = vector.broadcast %cst_36 : f32 to vector<4x192xf32>
      %183 = arith.addf %182, %181 : vector<4x192xf32>
      %184 = arith.divf %182, %183 : vector<4x192xf32>
      %185 = vector.extract_strided_slice %178 {offsets = [0, 192], sizes = [4, 64], strides = [1, 1]} : vector<4x256xf32> to vector<4x64xf32>
      %186 = math.tanh %185 : vector<4x64xf32>
      %187 = vector.extract_strided_slice %184 {offsets = [0, 0], sizes = [4, 64], strides = [1, 1]} : vector<4x192xf32> to vector<4x64xf32>
      %188 = vector.extract_strided_slice %184 {offsets = [0, 64], sizes = [4, 64], strides = [1, 1]} : vector<4x192xf32> to vector<4x64xf32>
      %189 = vector.extract_strided_slice %184 {offsets = [0, 128], sizes = [4, 64], strides = [1, 1]} : vector<4x192xf32> to vector<4x64xf32>
      %190 = arith.mulf %188, %164 : vector<4x64xf32>
      %191 = arith.mulf %187, %186 : vector<4x64xf32>
      %192 = arith.addf %190, %191 : vector<4x64xf32>
      %193 = math.tanh %192 : vector<4x64xf32>
      %194 = arith.mulf %189, %193 : vector<4x64xf32>
      %195 = vector.extract_strided_slice %194 {offsets = [0, 0], sizes = [2, 64], strides = [1, 1]} : vector<4x64xf32> to vector<2x64xf32>
      %196 = vector.extract_strided_slice %194 {offsets = [2, 0], sizes = [2, 64], strides = [1, 1]} : vector<4x64xf32> to vector<2x64xf32>
      %197 = vector.extract_strided_slice %31 {offsets = [12, 0], sizes = [2, 256], strides = [1, 1]} : vector<16x256xf32> to vector<2x256xf32>
      %198 = vector.extract_strided_slice %32 {offsets = [2, 0], sizes = [2, 256], strides = [1, 1]} : vector<16x256xf32> to vector<2x256xf32>
      %199 = tpu.concatenate %197, %198 in 0 : vector<2x256xf32>, vector<2x256xf32> -> vector<4x256xf32>
      %200 = vector.extract_strided_slice %194 {offsets = [0, 0], sizes = [2, 64], strides = [1, 1]} : vector<4x64xf32> to vector<2x64xf32>
      %201 = tpu.concatenate %200, %34 in 1 : vector<2x64xf32>, vector<2x64xf32> -> vector<2x128xf32>
      %202 = vector.extract_strided_slice %194 {offsets = [2, 0], sizes = [2, 64], strides = [1, 1]} : vector<4x64xf32> to vector<2x64xf32>
      %203 = tpu.concatenate %34, %202 in 1 : vector<2x64xf32>, vector<2x64xf32> -> vector<2x128xf32>
      %204 = tpu.concatenate %201, %203 in 0 : vector<2x128xf32>, vector<2x128xf32> -> vector<4x128xf32>
      %cst_37 = arith.constant dense<0.000000e+00> : vector<4x256xf32>
      %205 = tpu.matmul %204, %33, %cst_37 {dimension_numbers = #tpu.dot_dimension_numbers<[1], [0], [0], [1], [0, 0, 1, 1], [], []>} : vector<4x128xf32>, vector<128x256xf32>, vector<4x256xf32> -> vector<4x256xf32>
      %206 = arith.addf %199, %205 : vector<4x256xf32>
      %207 = vector.extract_strided_slice %206 {offsets = [0, 0], sizes = [4, 192], strides = [1, 1]} : vector<4x256xf32> to vector<4x192xf32>
      %208 = arith.negf %207 : vector<4x192xf32>
      %209 = math.exp %208 : vector<4x192xf32>
      %cst_38 = arith.constant 1.000000e+00 : f32
      %210 = vector.broadcast %cst_38 : f32 to vector<4x192xf32>
      %211 = arith.addf %210, %209 : vector<4x192xf32>
      %212 = arith.divf %210, %211 : vector<4x192xf32>
      %213 = vector.extract_strided_slice %206 {offsets = [0, 192], sizes = [4, 64], strides = [1, 1]} : vector<4x256xf32> to vector<4x64xf32>
      %214 = math.tanh %213 : vector<4x64xf32>
      %215 = vector.extract_strided_slice %212 {offsets = [0, 0], sizes = [4, 64], strides = [1, 1]} : vector<4x192xf32> to vector<4x64xf32>
      %216 = vector.extract_strided_slice %212 {offsets = [0, 64], sizes = [4, 64], strides = [1, 1]} : vector<4x192xf32> to vector<4x64xf32>
      %217 = vector.extract_strided_slice %212 {offsets = [0, 128], sizes = [4, 64], strides = [1, 1]} : vector<4x192xf32> to vector<4x64xf32>
      %218 = arith.mulf %216, %192 : vector<4x64xf32>
      %219 = arith.mulf %215, %214 : vector<4x64xf32>
      %220 = arith.addf %218, %219 : vector<4x64xf32>
      %221 = math.tanh %220 : vector<4x64xf32>
      %222 = arith.mulf %217, %221 : vector<4x64xf32>
      %223 = vector.extract_strided_slice %222 {offsets = [0, 0], sizes = [2, 64], strides = [1, 1]} : vector<4x64xf32> to vector<2x64xf32>
      %224 = vector.extract_strided_slice %222 {offsets = [2, 0], sizes = [2, 64], strides = [1, 1]} : vector<4x64xf32> to vector<2x64xf32>
      %225 = vector.extract_strided_slice %31 {offsets = [14, 0], sizes = [2, 256], strides = [1, 1]} : vector<16x256xf32> to vector<2x256xf32>
      %226 = vector.extract_strided_slice %32 {offsets = [0, 0], sizes = [2, 256], strides = [1, 1]} : vector<16x256xf32> to vector<2x256xf32>
      %227 = tpu.concatenate %225, %226 in 0 : vector<2x256xf32>, vector<2x256xf32> -> vector<4x256xf32>
      %228 = vector.extract_strided_slice %222 {offsets = [0, 0], sizes = [2, 64], strides = [1, 1]} : vector<4x64xf32> to vector<2x64xf32>
      %229 = tpu.concatenate %228, %34 in 1 : vector<2x64xf32>, vector<2x64xf32> -> vector<2x128xf32>
      %230 = vector.extract_strided_slice %222 {offsets = [2, 0], sizes = [2, 64], strides = [1, 1]} : vector<4x64xf32> to vector<2x64xf32>
      %231 = tpu.concatenate %34, %230 in 1 : vector<2x64xf32>, vector<2x64xf32> -> vector<2x128xf32>
      %232 = tpu.concatenate %229, %231 in 0 : vector<2x128xf32>, vector<2x128xf32> -> vector<4x128xf32>
      %cst_39 = arith.constant dense<0.000000e+00> : vector<4x256xf32>
      %233 = tpu.matmul %232, %33, %cst_39 {dimension_numbers = #tpu.dot_dimension_numbers<[1], [0], [0], [1], [0, 0, 1, 1], [], []>} : vector<4x128xf32>, vector<128x256xf32>, vector<4x256xf32> -> vector<4x256xf32>
      %234 = arith.addf %227, %233 : vector<4x256xf32>
      %235 = vector.extract_strided_slice %234 {offsets = [0, 0], sizes = [4, 192], strides = [1, 1]} : vector<4x256xf32> to vector<4x192xf32>
      %236 = arith.negf %235 : vector<4x192xf32>
      %237 = math.exp %236 : vector<4x192xf32>
      %cst_40 = arith.constant 1.000000e+00 : f32
      %238 = vector.broadcast %cst_40 : f32 to vector<4x192xf32>
      %239 = arith.addf %238, %237 : vector<4x192xf32>
      %240 = arith.divf %238, %239 : vector<4x192xf32>
      %241 = vector.extract_strided_slice %234 {offsets = [0, 192], sizes = [4, 64], strides = [1, 1]} : vector<4x256xf32> to vector<4x64xf32>
      %242 = math.tanh %241 : vector<4x64xf32>
      %243 = vector.extract_strided_slice %240 {offsets = [0, 0], sizes = [4, 64], strides = [1, 1]} : vector<4x192xf32> to vector<4x64xf32>
      %244 = vector.extract_strided_slice %240 {offsets = [0, 64], sizes = [4, 64], strides = [1, 1]} : vector<4x192xf32> to vector<4x64xf32>
      %245 = vector.extract_strided_slice %240 {offsets = [0, 128], sizes = [4, 64], strides = [1, 1]} : vector<4x192xf32> to vector<4x64xf32>
      %246 = arith.mulf %244, %220 : vector<4x64xf32>
      %247 = arith.mulf %243, %242 : vector<4x64xf32>
      %248 = arith.addf %246, %247 : vector<4x64xf32>
      %249 = math.tanh %248 : vector<4x64xf32>
      %250 = arith.mulf %245, %249 : vector<4x64xf32>
      %251 = vector.extract_strided_slice %250 {offsets = [0, 0], sizes = [2, 64], strides = [1, 1]} : vector<4x64xf32> to vector<2x64xf32>
      %252 = vector.extract_strided_slice %250 {offsets = [2, 0], sizes = [2, 64], strides = [1, 1]} : vector<4x64xf32> to vector<2x64xf32>
      %253 = tpu.concatenate %55, %252 in 1 : vector<2x64xf32>, vector<2x64xf32> -> vector<2x128xf32>
      %254 = tpu.concatenate %83, %224 in 1 : vector<2x64xf32>, vector<2x64xf32> -> vector<2x128xf32>
      %255 = tpu.concatenate %111, %196 in 1 : vector<2x64xf32>, vector<2x64xf32> -> vector<2x128xf32>
      %256 = tpu.concatenate %139, %168 in 1 : vector<2x64xf32>, vector<2x64xf32> -> vector<2x128xf32>
      %257 = tpu.concatenate %167, %140 in 1 : vector<2x64xf32>, vector<2x64xf32> -> vector<2x128xf32>
      %258 = tpu.concatenate %195, %112 in 1 : vector<2x64xf32>, vector<2x64xf32> -> vector<2x128xf32>
      %259 = tpu.concatenate %223, %84 in 1 : vector<2x64xf32>, vector<2x64xf32> -> vector<2x128xf32>
      %260 = tpu.concatenate %251, %56 in 1 : vector<2x64xf32>, vector<2x64xf32> -> vector<2x128xf32>
      %261 = tpu.concatenate %253, %254, %255, %256, %257, %258, %259, %260 in 0 : vector<2x128xf32>, vector<2x128xf32>, vector<2x128xf32>, vector<2x128xf32>, vector<2x128xf32>, vector<2x128xf32>, vector<2x128xf32>, vector<2x128xf32> -> vector<16x128xf32>
      %262 = arith.truncf %261 : vector<16x128xf32> to vector<16x128xbf16>
      %c0_41 = arith.constant 0 : index
      %c0_42 = arith.constant 0 : index
      %263 = vector.load %arg9[%c0_41, %c0_42] : memref<128x128xbf16, #tpu.memory_space<vmem>>, vector<128x128xbf16>
      %cst_43 = arith.constant dense<0.000000e+00> : vector<16x128xf32>
      %264 = tpu.matmul %262, %263, %cst_43 {dimension_numbers = #tpu.dot_dimension_numbers<[1], [0], [0], [1], [0, 0, 1, 1], [], []>} : vector<16x128xbf16>, vector<128x128xbf16>, vector<16x128xf32> -> vector<16x128xf32>
      %c0_44 = arith.constant 0 : index
      %c0_45 = arith.constant 0 : index
      %265 = vector.load %arg10[%c0_44, %c0_45] : memref<1x128xf32, #tpu.memory_space<vmem>>, vector<1x128xf32>
      %266 = vector.broadcast %265 : vector<1x128xf32> to vector<16x128xf32>
      %267 = arith.addf %264, %266 : vector<16x128xf32>
      %c0_46 = arith.constant 0 : index
      %c0_47 = arith.constant 0 : index
      %268 = vector.load %arg11[%c0_46, %c0_47] : memref<16x128xf32, #tpu.memory_space<vmem>>, vector<16x128xf32>
      tpu.vector_store %arg11[%c0_46, %c0_47], %267 {strides = array<i32>} : memref<16x128xf32, #tpu.memory_space<vmem>>, vector<16x128xf32>,
    } else {
    }
    return
  }
  func.func @transform_0(%arg0: i32, %arg1: i32) -> (i32, i32) {
    %c0_i32 = arith.constant 0 : i32
    return %arg0, %arg1 : i32, i32
  }
  func.func @transform_1(%arg0: i32, %arg1: i32) -> (i32, i32) {
    %c0_i32 = arith.constant 0 : i32
    %c0_i32_0 = arith.constant 0 : i32
    return %arg1, %c0_i32 : i32, i32
  }
  func.func @transform_2(%arg0: i32, %arg1: i32) -> (i32, i32) {
    %c0_i32 = arith.constant 0 : i32
    %c0_i32_0 = arith.constant 0 : i32
    %c0_i32_1 = arith.constant 0 : i32
    return %c0_i32, %c0_i32_0 : i32, i32
  }
  func.func @transform_3(%arg0: i32, %arg1: i32) -> (i32, i32) {
    %c0_i32 = arith.constant 0 : i32
    %c0_i32_0 = arith.constant 0 : i32
    %c0_i32_1 = arith.constant 0 : i32
    return %c0_i32, %c0_i32_0 : i32, i32
  }
  func.func @transform_4(%arg0: i32, %arg1: i32) -> (i32, i32) {
    %c0_i32 = arith.constant 0 : i32
    %c0_i32_0 = arith.constant 0 : i32
    %c0_i32_1 = arith.constant 0 : i32
    return %c0_i32, %c0_i32_0 : i32, i32
  }
  func.func @transform_5(%arg0: i32, %arg1: i32) -> (i32, i32) {
    %c0_i32 = arith.constant 0 : i32
    %c0_i32_0 = arith.constant 0 : i32
    %c0_i32_1 = arith.constant 0 : i32
    return %c0_i32, %c0_i32_0 : i32, i32
  }
  func.func @transform_6(%arg0: i32, %arg1: i32) -> (i32, i32) {
    %c0_i32 = arith.constant 0 : i32
    %c0_i32_0 = arith.constant 0 : i32
    %c0_i32_1 = arith.constant 0 : i32
    return %c0_i32, %c0_i32_0 : i32, i32
  }
  func.func @transform_7(%arg0: i32, %arg1: i32) -> (i32, i32) {
    %c0_i32 = arith.constant 0 : i32
    %c0_i32_0 = arith.constant 0 : i32
    %c0_i32_1 = arith.constant 0 : i32
    return %c0_i32, %c0_i32_0 : i32, i32
  }
  func.func @transform_8(%arg0: i32, %arg1: i32) -> (i32, i32) {
    %c0_i32 = arith.constant 0 : i32
    %c0_i32_0 = arith.constant 0 : i32
    %c0_i32_1 = arith.constant 0 : i32
    return %c0_i32, %c0_i32_0 : i32, i32
  }
  func.func @transform_9(%arg0: i32, %arg1: i32) -> (i32, i32) {
    %c0_i32 = arith.constant 0 : i32
    %c0_i32_0 = arith.constant 0 : i32
    return %arg0, %c0_i32 : i32, i32
  }
}

</mosaic_0001>

<bundles_post_ra>
// kernel: forward.1
= control target key start
LH: loop header
LB: loop body
LE: loop exit
PB: predicated region body
PF: predicated region fallthrough
CT: control target
= control target key end

     0   :  { %s4812_s30 = smov 0   ;;  %s4814_s10 = smov 0   ;;  %s5767_s0 = inlined_call_operand.vmem [shape: bf16[64,3072], index: 0, kind: input, shape index: {}]   ;;  %s5768_s1 = inlined_call_operand.vmem [shape: bf16[3072,128], index: 1, kind: input, shape index: {}]   ;;  %s5769_s2 = inlined_call_operand.vmem [shape: f32[1,128], index: 2, kind: input, shape index: {}]   ;;  %s5770_s3 = inlined_call_operand.vmem [shape: bf16[16,64], index: 3, kind: input, shape index: {}]   ;;  %s5771_s4 = inlined_call_operand.vmem [shape: bf16[128,512], index: 4, kind: input, shape index: {}]   ;;  %s5772_s5 = inlined_call_operand.vmem [shape: f32[1,512], index: 5, kind: input, shape index: {}]   ;;  %s5773_s6 = inlined_call_operand.vmem [shape: f32[128,256], index: 6, kind: input, shape index: {}]   ;;  %s5774_s7 = inlined_call_operand.vmem [shape: bf16[128,128], index: 7, kind: input, shape index: {}]   ;;  %s5775_s8 = inlined_call_operand.vmem [shape: f32[1,128], index: 8, kind: input, shape index: {}]   ;;  %s5776_s9 = inlined_call_operand.vmem [shape: f32[16,128], index: 9, kind: output, shape index: {}]  }
   0x1   :  { %s4816_s11 = smov 0   ;;  %s4818_s12 = smov 0  }
   0x2   :  { %s4820_s13 = smov 0  }
   0x3 LB: > { %s28_s14 = sadd.s32 1, %s4751_s12  ;;  %p47_p1 = scmp.ne.s32.totalorder %s4743_s10, %s4739_s30  ;;  %s4755_s13 = sphi %s4820_s13, %s19_s13   ;;  %s4751_s12 = sphi %s4818_s12, %s5780_s12   ;;  %s4747_s11 = sphi %s4816_s11, %s5779_s11   ;;  %s4743_s10 = sphi %s4814_s10, %s5778_s10   ;;  %s4739_s30 = sphi %s4812_s30, %s5777_s30  }
   0x4   : > { %p29_p0 = scmp.ge.s32.totalorder %s28_s14, 2  ;;  %p48_p2 = scmp.eq.s32.totalorder %s4755_s13, 0 }
   0x5   : > { %s40_s16 = sadd.s32 1, %s4743_s10  ;;  %p3584_p5 = scmp.ge.s32.totalorder %s4755_s13, 2 }
   0x6   : > { %s5782_s14 = smov (%p29_p0, %s28_s14), 0  ;;  %p49_p3 = por %p48_p2, %p47_p1 }
   0x7   : > { %s36_s15 = ssub.s32 %s4751_s12, %s5782_s14  ;;  %293 = sbr.rel (%p3584_p5) target bundleno = 43 (0x2b), region = 44 }
   0x8   : > { %p38_p4 = scmp.eq.s32.totalorder %s36_s15, 0 }
   0xa   : > { %s4847_s17 = scalar_select %p38_p4, %s4743_s10, %s40_s16  }
   0xe   : > { %296 = sbr.rel (!%p49_p3) target bundleno = 43 (0x2b), region = 48  ;;  %s298_s18 = sand.u32 (%p49_p3), 1, %s4743_s10  }
   0xf   : > { %s3806_s19 = smul.u32 (%p49_p3), 48, %s4751_s12 }
  0x10   : > { %s4317_s20 = smul.u32 (%p49_p3), 384, %s298_s18 }
  0x11   : > { %s4855_s23 = scalar_lea.vmem (%p49_p3), %s5767_s0, %s3806_s19 }
  0x12   : > { %v319_v0 = vld [vmem:[%s4855_s23] sm:$0xff] (%p49_p3)  ;;  %v321_v1 = vld [vmem:[%s4855_s23 + $0x8] sm:$0xff] (%p49_p3)  ;;  %v323_v2 = vld [vmem:[%s4855_s23 + $0x10] sm:$0xff] (%p49_p3)  ;;  %s4860_s24 = scalar_lea.vmem (%p49_p3), [#allocation3], %s4317_s20 }
  0x13   : > { %320 = vst [vmem:[%s4860_s24] sm:$0xff] (%p49_p3), %v319_v0  ;;  %322 = vst [vmem:[%s4860_s24 + $0x8] sm:$0xff] (%p49_p3), %v321_v1  ;;  %v325_v3 = vld [vmem:[%s4855_s23 + $0x18] sm:$0xff] (%p49_p3)  ;;  %v327_v4 = vld [vmem:[%s4855_s23 + $0x20] sm:$0xff] (%p49_p3) }
  0x14   : > { %324 = vst [vmem:[%s4860_s24 + $0x10] sm:$0xff] (%p49_p3), %v323_v2  ;;  %v329_v5 = vld [vmem:[%s4855_s23 + $0x28] sm:$0xff] (%p49_p3)  ;;  %326 = vst [vmem:[%s4860_s24 + $0x18] sm:$0xff] (%p49_p3), %v325_v3  ;;  %v331_v6 = vld [vmem:[%s4855_s23 + $0x60] sm:$0xff] (%p49_p3) }
  0x15   : > { %328 = vst [vmem:[%s4860_s24 + $0x20] sm:$0xff] %v327_v4  ;;  %330 = vst [vmem:[%s4860_s24 + $0x28] sm:$0xff] %v329_v5  ;;  %v333_v7 = vld [vmem:[%s4855_s23 + $0x68] sm:$0xff]  ;;  %v335_v8 = vld [vmem:[%s4855_s23 + $0x70] sm:$0xff] }
  0x16   : > { %332 = vst [vmem:[%s4860_s24 + $0x30] sm:$0xff] %v331_v6  ;;  %334 = vst [vmem:[%s4860_s24 + $0x38] sm:$0xff] %v333_v7  ;;  %v337_v9 = vld [vmem:[%s4855_s23 + $0x78] sm:$0xff]  ;;  %v339_v10 = vld [vmem:[%s4855_s23 + $0x80] sm:$0xff] }
  0x17   : > { %336 = vst [vmem:[%s4860_s24 + $0x40] sm:$0xff] %v335_v8  ;;  %v341_v11 = vld [vmem:[%s4855_s23 + $0x88] sm:$0xff]  ;;  %338 = vst [vmem:[%s4860_s24 + $0x48] sm:$0xff] %v337_v9  ;;  %v343_v12 = vld [vmem:[%s4855_s23 + $0xc0] sm:$0xff] }
  0x18   : > { %340 = vst [vmem:[%s4860_s24 + $0x50] sm:$0xff] %v339_v10  ;;  %342 = vst [vmem:[%s4860_s24 + $0x58] sm:$0xff] %v341_v11  ;;  %v345_v13 = vld [vmem:[%s4855_s23 + $0xc8] sm:$0xff]  ;;  %v347_v14 = vld [vmem:[%s4855_s23 + $0xd0] sm:$0xff] }
  0x19   : > { %344 = vst [vmem:[%s4860_s24 + $0x60] sm:$0xff] %v343_v12  ;;  %346 = vst [vmem:[%s4860_s24 + $0x68] sm:$0xff] %v345_v13  ;;  %v349_v15 = vld [vmem:[%s4855_s23 + $0xd8] sm:$0xff]  ;;  %v351_v16 = vld [vmem:[%s4855_s23 + $0xe0] sm:$0xff] }
  0x1a   : > { %348 = vst [vmem:[%s4860_s24 + $0x70] sm:$0xff] %v347_v14  ;;  %v353_v17 = vld [vmem:[%s4855_s23 + $0xe8] sm:$0xff]  ;;  %350 = vst [vmem:[%s4860_s24 + $0x78] sm:$0xff] %v349_v15  ;;  %v355_v18 = vld [vmem:[%s4855_s23 + $0x120] sm:$0xff] }
  0x1b   : > { %352 = vst [vmem:[%s4860_s24 + $0x80] sm:$0xff] %v351_v16  ;;  %354 = vst [vmem:[%s4860_s24 + $0x88] sm:$0xff] %v353_v17  ;;  %v357_v19 = vld [vmem:[%s4855_s23 + $0x128] sm:$0xff]  ;;  %v359_v20 = vld [vmem:[%s4855_s23 + $0x130] sm:$0xff] }
  0x1c   : > { %356 = vst [vmem:[%s4860_s24 + $0x90] sm:$0xff] %v355_v18  ;;  %358 = vst [vmem:[%s4860_s24 + $0x98] sm:$0xff] %v357_v19  ;;  %v361_v21 = vld [vmem:[%s4855_s23 + $0x138] sm:$0xff]  ;;  %v363_v22 = vld [vmem:[%s4855_s23 + $0x140] sm:$0xff] }
  0x1d   : > { %360 = vst [vmem:[%s4860_s24 + $0xa0] sm:$0xff] %v359_v20  ;;  %v365_v23 = vld [vmem:[%s4855_s23 + $0x148] sm:$0xff]  ;;  %362 = vst [vmem:[%s4860_s24 + $0xa8] sm:$0xff] %v361_v21  ;;  %v367_v24 = vld [vmem:[%s4855_s23 + $0x180] sm:$0xff] }
  0x1e   : > { %364 = vst [vmem:[%s4860_s24 + $0xb0] sm:$0xff] %v363_v22  ;;  %366 = vst [vmem:[%s4860_s24 + $0xb8] sm:$0xff] %v365_v23  ;;  %v369_v25 = vld [vmem:[%s4855_s23 + $0x188] sm:$0xff]  ;;  %v371_v26 = vld [vmem:[%s4855_s23 + $0x190] sm:$0xff] }
  0x1f   : > { %368 = vst [vmem:[%s4860_s24 + $0xc0] sm:$0xff] %v367_v24  ;;  %370 = vst [vmem:[%s4860_s24 + $0xc8] sm:$0xff] %v369_v25  ;;  %v373_v27 = vld [vmem:[%s4855_s23 + $0x198] sm:$0xff]  ;;  %v375_v28 = vld [vmem:[%s4855_s23 + $0x1a0] sm:$0xff] }
  0x20   : > { %372 = vst [vmem:[%s4860_s24 + $0xd0] sm:$0xff] %v371_v26  ;;  %v377_v29 = vld [vmem:[%s4855_s23 + $0x1a8] sm:$0xff]  ;;  %374 = vst [vmem:[%s4860_s24 + $0xd8] sm:$0xff] %v373_v27  ;;  %v379_v30 = vld [vmem:[%s4855_s23 + $0x1e0] sm:$0xff] }
  0x21   : > { %376 = vst [vmem:[%s4860_s24 + $0xe0] sm:$0xff] %v375_v28  ;;  %378 = vst [vmem:[%s4860_s24 + $0xe8] sm:$0xff] %v377_v29  ;;  %v381_v31 = vld [vmem:[%s4855_s23 + $0x1e8] sm:$0xff]  ;;  %v383_v32 = vld [vmem:[%s4855_s23 + $0x1f0] sm:$0xff] }
  0x22   : > { %380 = vst [vmem:[%s4860_s24 + $0xf0] sm:$0xff] %v379_v30  ;;  %382 = vst [vmem:[%s4860_s24 + $0xf8] sm:$0xff] %v381_v31  ;;  %v385_v33 = vld [vmem:[%s4855_s23 + $0x1f8] sm:$0xff]  ;;  %v387_v34 = vld [vmem:[%s4855_s23 + $0x200] sm:$0xff] }
  0x23   : > { %384 = vst [vmem:[%s4860_s24 + $0x100] sm:$0xff] %v383_v32  ;;  %v389_v35 = vld [vmem:[%s4855_s23 + $0x208] sm:$0xff]  ;;  %386 = vst [vmem:[%s4860_s24 + $0x108] sm:$0xff] %v385_v33  ;;  %v391_v36 = vld [vmem:[%s4855_s23 + $0x240] sm:$0xff] }
  0x24   : > { %388 = vst [vmem:[%s4860_s24 + $0x110] sm:$0xff] %v387_v34  ;;  %390 = vst [vmem:[%s4860_s24 + $0x118] sm:$0xff] %v389_v35  ;;  %v393_v37 = vld [vmem:[%s4855_s23 + $0x248] sm:$0xff]  ;;  %v395_v38 = vld [vmem:[%s4855_s23 + $0x250] sm:$0xff] }
  0x25   : > { %392 = vst [vmem:[%s4860_s24 + $0x120] sm:$0xff] %v391_v36  ;;  %394 = vst [vmem:[%s4860_s24 + $0x128] sm:$0xff] %v393_v37  ;;  %v397_v39 = vld [vmem:[%s4855_s23 + $0x258] sm:$0xff]  ;;  %v399_v40 = vld [vmem:[%s4855_s23 + $0x260] sm:$0xff] }
  0x26   : > { %396 = vst [vmem:[%s4860_s24 + $0x130] sm:$0xff] %v395_v38  ;;  %v401_v41 = vld [vmem:[%s4855_s23 + $0x268] sm:$0xff]  ;;  %398 = vst [vmem:[%s4860_s24 + $0x138] sm:$0xff] %v397_v39  ;;  %v403_v42 = vld [vmem:[%s4855_s23 + $0x2a0] sm:$0xff] }
  0x27   : > { %400 = vst [vmem:[%s4860_s24 + $0x140] sm:$0xff] %v399_v40  ;;  %402 = vst [vmem:[%s4860_s24 + $0x148] sm:$0xff] %v401_v41  ;;  %v405_v43 = vld [vmem:[%s4855_s23 + $0x2a8] sm:$0xff]  ;;  %v407_v44 = vld [vmem:[%s4855_s23 + $0x2b0] sm:$0xff] }
  0x28   : > { %404 = vst [vmem:[%s4860_s24 + $0x150] sm:$0xff] %v403_v42  ;;  %406 = vst [vmem:[%s4860_s24 + $0x158] sm:$0xff] %v405_v43  ;;  %v409_v45 = vld [vmem:[%s4855_s23 + $0x2b8] sm:$0xff]  ;;  %v411_v46 = vld [vmem:[%s4855_s23 + $0x2c0] sm:$0xff] }
  0x29   : > { %408 = vst [vmem:[%s4860_s24 + $0x160] sm:$0xff] %v407_v44  ;;  %v413_v47 = vld [vmem:[%s4855_s23 + $0x2c8] sm:$0xff]  ;;  %410 = vst [vmem:[%s4860_s24 + $0x168] sm:$0xff] %v409_v45 }
  0x2a   : > { %412 = vst [vmem:[%s4860_s24 + $0x170] sm:$0xff] %v411_v46  ;;  %414 = vst [vmem:[%s4860_s24 + $0x178] sm:$0xff] %v413_v47 }
  0x2b PF: > { %p3586_p6 = scmp.ge.s32.totalorder %s4755_s13, 1  ;;  %p428_p7 = scmp.lt.s32.totalorder %s4755_s13, 3 }
  0x2d   : > { %p429_p8 = pnand %p3586_p6, %p428_p7 }
  0x2e   : > { %s435_s25 = sand.u32 (!%p429_p8), 1, %s4739_s30   ;;  %s477_s26 = smul.u32 (!%p429_p8), 192, %s4747_s11 }
  0x2f   : > { %432 = sbr.rel (%p429_p8) target bundleno = 6562 (0x19a2), region = 75  ;;  %p3588_p10 = scmp.ne.s32.totalorder (!%p429_p8), %s4747_s11, 0 }
  0x30   : > { %s4318_s27 = smul.u32 (!%p429_p8), 384, %s435_s25  ;;  %p478_p9 = scmp.lt.s32.totalorder (!%p429_p8), %s477_s26, 383 }
  0x32   : > { %s4964_s18 = scalar_lea.vmem (!%p429_p8), [#allocation3], %s4318_s27 }
  0x36   : > { %s5784_s26 = smov (!%p478_p9, %s477_s26), 383  ;;  %493 = sbr.rel (%p3588_p10) target bundleno = 61 (0x3d), region = 83 }
  0x37   : > { %s3587_s28 = sshll.u32 %s5784_s26, 2  ;;  %v4757_v48 = vmov (!%p3588_p10), 0.0  }
  0x38   : > { %s4962_s16 = scalar_lea.vmem %s5768_s1, %s3587_s28  ;;  %494 = vst [vmem:[#allocation2] sm:$0xff] (!%p3588_p10), %v4757_v48  ;;  %495 = vst [vmem:[#allocation2 + $0x8] sm:$0xff] (!%p3588_p10), %v4757_v48 }
  0x39   : > { %496 = vst [vmem:[#allocation2 + $0x10] sm:$0xff] (!%p3588_p10), %v4757_v48  ;;  %497 = vst [vmem:[#allocation2 + $0x18] sm:$0xff] (!%p3588_p10), %v4757_v48 }
  0x3a   : > { %498 = vst [vmem:[#allocation2 + $0x20] sm:$0xff] (!%p3588_p10), %v4757_v48  ;;  %499 = vst [vmem:[#allocation2 + $0x28] sm:$0xff] (!%p3588_p10), %v4757_v48 }
  0x3b   : > { %500 = vst [vmem:[#allocation2 + $0x30] sm:$0xff] (!%p3588_p10), %v4757_v48  ;;  %501 = vst [vmem:[#allocation2 + $0x38] sm:$0xff] (!%p3588_p10), %v4757_v48 }
  0x3d PF: > { %v4364_v49 = vld [vmem:[%s4962_s16 + $0x40] sm:$0xff]   ;;  %v4368_v53 = vld [vmem:[%s4962_s16 + $0x48] sm:$0xff]   ;;  %v4372_v57 = vld [vmem:[%s4962_s16 + $0x50] sm:$0xff]   ;;  %p3733_p11 = scmp.ne.s32.totalorder %s4747_s11, 1 }
  0x3e   : > { %v4365_v50 = vld [vmem:[%s4962_s16 + $0xc0] sm:$0xff]   ;;  %3807 = vmatprep.subr.bf16.mxu0 %v4364_v49  ;;  %v4369_v54 = vld [vmem:[%s4962_s16 + $0xc8] sm:$0xff]   ;;  %v4373_v58 = vld [vmem:[%s4962_s16 + $0xd0] sm:$0xff]   ;;  %vm4759_vm0 = vmmov (!%p3733_p11), 0   ;;  %vm2066_vm1 = vcmask (!%p3733_p11), 523264   ;;  %vm2450_vm2 = vcmask (!%p3733_p11), 1041408  }
  0x3f   : > { %v4366_v51 = vld [vmem:[%s4962_s16] sm:$0xff]   ;;  %3847 = vmatprep.subr.bf16.mxu1 %v4365_v50  ;;  %v4370_v55 = vld [vmem:[%s4962_s16 + $0x8] sm:$0xff]   ;;  %v4374_v59 = vld [vmem:[%s4962_s16 + $0x10] sm:$0xff]   ;;  %s4761_s23 = smov (!%p3733_p11), 64   ;;  %vm3377_vm3 = vcmask (!%p3733_p11), 1043456   ;;  %vm3379_vm4 = vcmask (!%p3733_p11), 1045504  }
  0x40   : > { %v4367_v52 = vld [vmem:[%s4962_s16 + $0x80] sm:$0xff]   ;;  %3808 = vmatpush3.bf16.msra.mxu0 %v4366_v51  ;;  %v4371_v56 = vld [vmem:[%s4962_s16 + $0x88] sm:$0xff]   ;;  %v4375_v60 = vld [vmem:[%s4962_s16 + $0x90] sm:$0xff]  }
  0x41   : > { %3848 = vmatpush3.bf16.msra.mxu1 %v4367_v52  ;;  %3809 = vmatprep.subr.bf16.mxu0 %v4368_v53  ;;  %v4376_v61 = vld [vmem:[%s4962_s16 + $0x58] sm:$0xff]   ;;  %v4380_v1 = vld [vmem:[%s4962_s16 + $0x60] sm:$0xff]   ;;  %v4384_v5 = vld [vmem:[%s4962_s16 + $0x68] sm:$0xff]  }
  0x42   : > { %3849 = vmatprep.subr.bf16.mxu1 %v4369_v54  ;;  %v4377_v62 = vld [vmem:[%s4962_s16 + $0xd8] sm:$0xff]   ;;  %v4381_v2 = vld [vmem:[%s4962_s16 + $0xe0] sm:$0xff]   ;;  %v4385_v6 = vld [vmem:[%s4962_s16 + $0xe8] sm:$0xff]  }
  0x43   : > { %v4378_v63 = vld [vmem:[%s4962_s16 + $0x18] sm:$0xff]   ;;  %v4382_v3 = vld [vmem:[%s4962_s16 + $0x20] sm:$0xff]   ;;  %v4386_v7 = vld [vmem:[%s4962_s16 + $0x28] sm:$0xff]  }
  0x44   : > { %3810 = vmatpush3.bf16.msra.mxu0 %v4370_v55  ;;  %v4379_v0 = vld [vmem:[%s4962_s16 + $0x98] sm:$0xff]   ;;  %v4383_v4 = vld [vmem:[%s4962_s16 + $0xa0] sm:$0xff]   ;;  %v4387_v8 = vld [vmem:[%s4962_s16 + $0xa8] sm:$0xff]  }
  0x45   : > { %3850 = vmatpush3.bf16.msra.mxu1 %v4371_v56  ;;  %3811 = vmatprep.subr.bf16.mxu0 %v4372_v57  ;;  %v4388_v9 = vld [vmem:[%s4962_s16 + $0x70] sm:$0xff]   ;;  %v4392_v13 = vld [vmem:[%s4962_s16 + $0x78] sm:$0xff]   ;;  %v4402_v21 = vld [vmem:[%s4962_s16 + $0x140] sm:$0xff]  }
  0x46   : > { %3851 = vmatprep.subr.bf16.mxu1 %v4373_v58  ;;  %v4389_v10 = vld [vmem:[%s4962_s16 + $0xf0] sm:$0xff]   ;;  %v4393_v14 = vld [vmem:[%s4962_s16 + $0xf8] sm:$0xff]   ;;  %v4403_v22 = vld [vmem:[%s4962_s16 + $0x1c0] sm:$0xff]  }
  0x47   : > { %v4390_v11 = vld [vmem:[%s4962_s16 + $0x30] sm:$0xff]   ;;  %v4394_v15 = vld [vmem:[%s4962_s16 + $0x38] sm:$0xff]   ;;  %v4404_v23 = vld [vmem:[%s4962_s16 + $0x100] sm:$0xff]  }
  0x48   : > { %3812 = vmatpush3.bf16.msra.mxu0 %v4374_v59  ;;  %v4391_v12 = vld [vmem:[%s4962_s16 + $0xb0] sm:$0xff]   ;;  %v4395_v16 = vld [vmem:[%s4962_s16 + $0xb8] sm:$0xff]   ;;  %v4405_v24 = vld [vmem:[%s4962_s16 + $0x180] sm:$0xff]  }
  0x49   : > { %3852 = vmatpush3.bf16.msra.mxu1 %v4375_v60  ;;  %3813 = vmatprep.subr.bf16.mxu0 %v4376_v61  ;;  %v4396_v17 = vld [vmem:[%s4964_s18] ss:$48 sps:$4 sm:$0xff]   ;;  %v4398_v18 = vld [vmem:[%s4964_s18 + $0x4] ss:$48 sps:$4 sm:$0xff]   ;;  %v4399_v19 = vld [vmem:[%s4964_s18 + $0x8] ss:$48 sps:$4 sm:$0xff]  }
  0x4a   : > { %3853 = vmatprep.subr.bf16.mxu1 %v4377_v62  ;;  %v4401_v20 = vld [vmem:[%s4964_s18 + $0xc] ss:$48 sps:$4 sm:$0xff]   ;;  %1598 = vmatprep.mubr.bf16.mxu0 %v4398_v18  ;;  %v4410_v29 = vld [vmem:[%s4964_s18 + $0x64] ss:$48 sps:$4 sm:$0xff]   ;;  %v4414_v31 = vld [vmem:[%s4964_s18 + $0x60] ss:$48 sps:$4 sm:$0xff]  }
  0x4b   : > { %1663 = vmatprep.mubr.bf16.mxu1 %v4401_v20  ;;  %v4406_v25 = vld [vmem:[%s4962_s16 + $0x148] sm:$0xff]   ;;  %v4416_v33 = vld [vmem:[%s4962_s16 + $0x150] sm:$0xff]   ;;  %v4420_v37 = vld [vmem:[%s4962_s16 + $0x158] sm:$0xff]  }
  0x4c   : > { %3814 = vmatpush3.bf16.msra.mxu0 %v4378_v63  ;;  %v4407_v26 = vld [vmem:[%s4962_s16 + $0x1c8] sm:$0xff]   ;;  %v4417_v34 = vld [vmem:[%s4962_s16 + $0x1d0] sm:$0xff]   ;;  %v4421_v38 = vld [vmem:[%s4962_s16 + $0x1d8] sm:$0xff]  }
  0x4d   : > { %3854 = vmatpush3.bf16.msra.mxu1 %v4379_v0  ;;  %3815 = vmatprep.subr.bf16.mxu0 %v4380_v1  ;;  %v4408_v27 = vld [vmem:[%s4962_s16 + $0x108] sm:$0xff]   ;;  %v4418_v35 = vld [vmem:[%s4962_s16 + $0x110] sm:$0xff]   ;;  %v4422_v39 = vld [vmem:[%s4962_s16 + $0x118] sm:$0xff]  }
  0x4e   : > { %3855 = vmatprep.subr.bf16.mxu1 %v4381_v2  ;;  %v4409_v28 = vld [vmem:[%s4962_s16 + $0x188] sm:$0xff]   ;;  %v4419_v36 = vld [vmem:[%s4962_s16 + $0x190] sm:$0xff]   ;;  %v4423_v40 = vld [vmem:[%s4962_s16 + $0x198] sm:$0xff]  }
  0x4f   : > { %v4412_v30 = vld [vmem:[%s4964_s18 + $0x6c] ss:$48 sps:$4 sm:$0xff]   ;;  %v4415_v32 = vld [vmem:[%s4964_s18 + $0x68] ss:$48 sps:$4 sm:$0xff]   ;;  %v4424_v41 = vld [vmem:[%s4964_s18 + $0xc4] ss:$48 sps:$4 sm:$0xff]  }
  0x50   : > { %3816 = vmatpush3.bf16.msra.mxu0 %v4382_v3  ;;  %v4426_v42 = vld [vmem:[%s4964_s18 + $0xcc] ss:$48 sps:$4 sm:$0xff]   ;;  %v4428_v43 = vld [vmem:[%s4964_s18 + $0xc0] ss:$48 sps:$4 sm:$0xff]   ;;  %v4429_v44 = vld [vmem:[%s4964_s18 + $0xc8] ss:$48 sps:$4 sm:$0xff]  }
  0x51   : > { %3856 = vmatpush3.bf16.msra.mxu1 %v4383_v4  ;;  %3817 = vmatprep.subr.bf16.mxu0 %v4384_v5  ;;  %v4430_v45 = vld [vmem:[%s4962_s16 + $0x160] sm:$0xff]   ;;  %v4434_v49 = vld [vmem:[%s4962_s16 + $0x168] sm:$0xff]   ;;  %v4444_v57 = vld [vmem:[%s4962_s16 + $0x170] sm:$0xff]  }
  0x52   : > { %3857 = vmatprep.subr.bf16.mxu1 %v4385_v6  ;;  %v4431_v46 = vld [vmem:[%s4962_s16 + $0x1e0] sm:$0xff]   ;;  %v4435_v50 = vld [vmem:[%s4962_s16 + $0x1e8] sm:$0xff]   ;;  %v4445_v58 = vld [vmem:[%s4962_s16 + $0x1f0] sm:$0xff]  }
  0x53   : > { %v4432_v47 = vld [vmem:[%s4962_s16 + $0x120] sm:$0xff]   ;;  %v4436_v51 = vld [vmem:[%s4962_s16 + $0x128] sm:$0xff]   ;;  %v4446_v59 = vld [vmem:[%s4962_s16 + $0x130] sm:$0xff]  }
  0x54   : > { %3818 = vmatpush3.bf16.msra.mxu0 %v4386_v7  ;;  %v4433_v48 = vld [vmem:[%s4962_s16 + $0x1a0] sm:$0xff]   ;;  %v4437_v52 = vld [vmem:[%s4962_s16 + $0x1a8] sm:$0xff]   ;;  %v4447_v60 = vld [vmem:[%s4962_s16 + $0x1b0] sm:$0xff]  }
  0x55   : > { %3858 = vmatpush3.bf16.msra.mxu1 %v4387_v8  ;;  %3819 = vmatprep.subr.bf16.mxu0 %v4388_v9  ;;  %v4438_v53 = vld [vmem:[%s4964_s18 + $0x124] ss:$48 sps:$4 sm:$0xff]   ;;  %v4440_v54 = vld [vmem:[%s4964_s18 + $0x12c] ss:$48 sps:$4 sm:$0xff]   ;;  %v4442_v55 = vld [vmem:[%s4964_s18 + $0x120] ss:$48 sps:$4 sm:$0xff]  }
  0x56   : > { %3859 = vmatprep.subr.bf16.mxu1 %v4389_v10  ;;  %v4443_v56 = vld [vmem:[%s4964_s18 + $0x128] ss:$48 sps:$4 sm:$0xff]   ;;  %v4452_v1 = vld [vmem:[%s4964_s18 + $0x10] ss:$48 sps:$4 sm:$0xff]   ;;  %v4454_v2 = vld [vmem:[%s4964_s18 + $0x14] ss:$48 sps:$4 sm:$0xff]  }
  0x57   : > { %v4448_v61 = vld [vmem:[%s4962_s16 + $0x178] sm:$0xff]   ;;  %v4458_v5 = vld [vmem:[%s4962_s16 + $0x240] sm:$0xff]   ;;  %v4462_v9 = vld [vmem:[%s4962_s16 + $0x248] sm:$0xff]  }
  0x58   : > { %3820 = vmatpush3.bf16.msra.mxu0 %v4390_v11  ;;  %v4449_v62 = vld [vmem:[%s4962_s16 + $0x1f8] sm:$0xff]   ;;  %v4459_v6 = vld [vmem:[%s4962_s16 + $0x2c0] sm:$0xff]   ;;  %v4463_v10 = vld [vmem:[%s4962_s16 + $0x2c8] sm:$0xff]  }
  0x59   : > { %3860 = vmatpush3.bf16.msra.mxu1 %v4391_v12  ;;  %3821 = vmatprep.subr.bf16.mxu0 %v4392_v13  ;;  %v4450_v63 = vld [vmem:[%s4962_s16 + $0x138] sm:$0xff]   ;;  %v4460_v7 = vld [vmem:[%s4962_s16 + $0x200] sm:$0xff]   ;;  %v4464_v11 = vld [vmem:[%s4962_s16 + $0x208] sm:$0xff]  }
  0x5a   : > { %3861 = vmatprep.subr.bf16.mxu1 %v4393_v14  ;;  %v4451_v0 = vld [vmem:[%s4962_s16 + $0x1b8] sm:$0xff]   ;;  %v4461_v8 = vld [vmem:[%s4962_s16 + $0x280] sm:$0xff]   ;;  %v4465_v12 = vld [vmem:[%s4962_s16 + $0x288] sm:$0xff]  }
  0x5b   : > { %v4455_v3 = vld [vmem:[%s4964_s18 + $0x18] ss:$48 sps:$4 sm:$0xff]   ;;  %v4457_v4 = vld [vmem:[%s4964_s18 + $0x1c] ss:$48 sps:$4 sm:$0xff]   ;;  %v4466_v13 = vld [vmem:[%s4964_s18 + $0x74] ss:$48 sps:$4 sm:$0xff]  }
  0x5c   : > { %3822 = vmatpush3.bf16.msra.mxu0 %v4394_v15  ;;  %v4468_v14 = vld [vmem:[%s4964_s18 + $0x7c] ss:$48 sps:$4 sm:$0xff]   ;;  %v4470_v15 = vld [vmem:[%s4964_s18 + $0x70] ss:$48 sps:$4 sm:$0xff]  }
  0x5d   : > { %3862 = vmatpush3.bf16.msra.mxu1 %v4395_v16  ;;  %3887 = vmatprep.subr.bf16.mxu0 %v4402_v21  ;;  %v4471_v16 = vld [vmem:[%s4964_s18 + $0x78] ss:$48 sps:$4 sm:$0xff]   ;;  %v4473_v18 = vld [vmem:[%s4962_s16 + $0x2d0] sm:$0xff]  }
  0x5e   : > { %3927 = vmatprep.subr.bf16.mxu1 %v4403_v22  ;;  %v4475_v20 = vld [vmem:[%s4962_s16 + $0x290] sm:$0xff]   ;;  %v4476_v21 = vld [vmem:[%s4962_s16 + $0x258] sm:$0xff]  }
  0x5f   : > { %1599 = vmatmul.mubr.bf16.vlgmr.msra.gmra.mrb[0].mxu0 %v4396_v17  ;;  %v4472_v17 = vld [vmem:[%s4962_s16 + $0x250] sm:$0xff]   ;;  %v4477_v22 = vld [vmem:[%s4962_s16 + $0x2d8] sm:$0xff]  }
  0x60   : > { %1664 = vmatmul.mubr.bf16.vlgmr.msra.gmra.mrb[0].mxu1 %v4399_v19  ;;  %3888 = vmatpush3.bf16.msra.mxu0 %v4404_v23  ;;  %v4474_v19 = vld [vmem:[%s4962_s16 + $0x210] sm:$0xff]   ;;  %v4478_v23 = vld [vmem:[%s4962_s16 + $0x218] sm:$0xff]  }
  0x61   : > { %3928 = vmatpush3.bf16.msra.mxu1 %v4405_v24  ;;  %3889 = vmatprep.subr.bf16.mxu0 %v4406_v25  ;;  %v4479_v24 = vld [vmem:[%s4962_s16 + $0x298] sm:$0xff]   ;;  %v4480_v25 = vld [vmem:[%s4964_s18 + $0xd4] ss:$48 sps:$4 sm:$0xff]  }
  0x62   : > { %3929 = vmatprep.subr.bf16.mxu1 %v4407_v26  ;;  %1606 = vmatprep.mubr.bf16.mxu0 %v4410_v29  ;;  %v4482_v26 = vld [vmem:[%s4964_s18 + $0xdc] ss:$48 sps:$4 sm:$0xff]   ;;  %v4486_v29 = vld [vmem:[%s4962_s16 + $0x260] sm:$0xff]  }
  0x63   : > { %1671 = vmatprep.mubr.bf16.mxu1 %v4412_v30  ;;  %v4487_v30 = vld [vmem:[%s4962_s16 + $0x2e0] sm:$0xff]  }
  0x64   : > { %3890 = vmatpush3.bf16.msra.mxu0 %v4408_v27  ;;  %v4484_v27 = vld [vmem:[%s4964_s18 + $0xd0] ss:$48 sps:$4 sm:$0xff]  }
  0x65   : > { %3930 = vmatpush3.bf16.msra.mxu1 %v4409_v28  ;;  %3891 = vmatprep.subr.bf16.mxu0 %v4416_v33  ;;  %v4485_v28 = vld [vmem:[%s4964_s18 + $0xd8] ss:$48 sps:$4 sm:$0xff]  }
  0x66   : > { %3931 = vmatprep.subr.bf16.mxu1 %v4417_v34  ;;  %v4490_v33 = vld [vmem:[%s4962_s16 + $0x268] sm:$0xff]  }
  0x67   : > { %1607 = vmatmul.mubr.bf16.gmra.mrb[4].mxu0 %v4414_v31  ;;  %v4488_v31 = vld [vmem:[%s4962_s16 + $0x220] sm:$0xff]   ;;  %v4491_v34 = vld [vmem:[%s4962_s16 + $0x2e8] sm:$0xff]  }
  0x68   : > { %1672 = vmatmul.mubr.bf16.gmra.mrb[4].mxu1 %v4415_v32  ;;  %3892 = vmatpush3.bf16.msra.mxu0 %v4418_v35  ;;  %v4489_v32 = vld [vmem:[%s4962_s16 + $0x2a0] sm:$0xff]   ;;  %v4492_v35 = vld [vmem:[%s4962_s16 + $0x228] sm:$0xff]  }
  0x69   : > { %3932 = vmatpush3.bf16.msra.mxu1 %v4419_v36  ;;  %3893 = vmatprep.subr.bf16.mxu0 %v4420_v37  ;;  %v4493_v36 = vld [vmem:[%s4962_s16 + $0x2a8] sm:$0xff]   ;;  %v4494_v37 = vld [vmem:[%s4964_s18 + $0x134] ss:$48 sps:$4 sm:$0xff]  }
  0x6a   : > { %3933 = vmatprep.subr.bf16.mxu1 %v4421_v38  ;;  %1614 = vmatprep.mubr.bf16.mxu0 %v4424_v41  ;;  %v4496_v38 = vld [vmem:[%s4964_s18 + $0x13c] ss:$48 sps:$4 sm:$0xff]   ;;  %v4500_v41 = vld [vmem:[%s4962_s16 + $0x270] sm:$0xff]  }
  0x6b   : > { %1679 = vmatprep.mubr.bf16.mxu1 %v4426_v42  ;;  %v4501_v42 = vld [vmem:[%s4962_s16 + $0x2f0] sm:$0xff]  }
  0x6c   : > { %3894 = vmatpush3.bf16.msra.mxu0 %v4422_v39  ;;  %v4498_v39 = vld [vmem:[%s4964_s18 + $0x130] ss:$48 sps:$4 sm:$0xff]  }
  0x6d   : > { %3934 = vmatpush3.bf16.msra.mxu1 %v4423_v40  ;;  %3895 = vmatprep.subr.bf16.mxu0 %v4430_v45  ;;  %v4499_v40 = vld [vmem:[%s4964_s18 + $0x138] ss:$48 sps:$4 sm:$0xff]  }
  0x6e   : > { %3935 = vmatprep.subr.bf16.mxu1 %v4431_v46  ;;  %v4504_v45 = vld [vmem:[%s4962_s16 + $0x278] sm:$0xff]  }
  0x6f   : > { %1615 = vmatmul.mubr.bf16.gmra.mrb[8].mxu0 %v4428_v43  ;;  %v4502_v43 = vld [vmem:[%s4962_s16 + $0x230] sm:$0xff]   ;;  %v4505_v46 = vld [vmem:[%s4962_s16 + $0x2f8] sm:$0xff]  }
  0x70   : > { %1680 = vmatmul.mubr.bf16.gmra.mrb[8].mxu1 %v4429_v44  ;;  %3896 = vmatpush3.bf16.msra.mxu0 %v4432_v47  ;;  %v4503_v44 = vld [vmem:[%s4962_s16 + $0x2b0] sm:$0xff]   ;;  %v4506_v47 = vld [vmem:[%s4962_s16 + $0x238] sm:$0xff]  }
  0x71   : > { %3936 = vmatpush3.bf16.msra.mxu1 %v4433_v48  ;;  %3897 = vmatprep.subr.bf16.mxu0 %v4434_v49  ;;  %v4507_v48 = vld [vmem:[%s4962_s16 + $0x2b8] sm:$0xff]   ;;  %v4508_v49 = vld [vmem:[%s4964_s18 + $0x20] ss:$48 sps:$4 sm:$0xff]  }
  0x72   : > { %3937 = vmatprep.subr.bf16.mxu1 %v4435_v50  ;;  %1622 = vmatprep.mubr.bf16.mxu0 %v4438_v53  ;;  %v4510_v50 = vld [vmem:[%s4964_s18 + $0x24] ss:$48 sps:$4 sm:$0xff]  }
  0x73   : > { %1687 = vmatprep.mubr.bf16.mxu1 %v4440_v54  ;;  %v4514_v53 = vld [vmem:[%s4964_s18 + $0x84] ss:$48 sps:$4 sm:$0xff]   ;;  %v4516_v54 = vld [vmem:[%s4964_s18 + $0x8c] ss:$48 sps:$4 sm:$0xff]  }
  0x74   : > { %3898 = vmatpush3.bf16.msra.mxu0 %v4436_v51  ;;  %v4511_v51 = vld [vmem:[%s4964_s18 + $0x28] ss:$48 sps:$4 sm:$0xff]  }
  0x75   : > { %3938 = vmatpush3.bf16.msra.mxu1 %v4437_v52  ;;  %3899 = vmatprep.subr.bf16.mxu0 %v4444_v57  ;;  %v4513_v52 = vld [vmem:[%s4964_s18 + $0x2c] ss:$48 sps:$4 sm:$0xff]   ;;  %v4520_v57 = vld [vmem:[%s4964_s18 + $0xe4] ss:$48 sps:$4 sm:$0xff]  }
  0x76   : > { %3939 = vmatprep.subr.bf16.mxu1 %v4445_v58  ;;  %v4522_v58 = vld [vmem:[%s4964_s18 + $0xec] ss:$48 sps:$4 sm:$0xff]  }
  0x77   : > { %1623 = vmatmul.mubr.bf16.gmra.mrb[12].mxu0 %v4442_v55  ;;  %v4518_v55 = vld [vmem:[%s4964_s18 + $0x80] ss:$48 sps:$4 sm:$0xff]  }
  0x78   : > { %1688 = vmatmul.mubr.bf16.gmra.mrb[12].mxu1 %v4443_v56  ;;  %3900 = vmatpush3.bf16.msra.mxu0 %v4446_v59  ;;  %v4519_v56 = vld [vmem:[%s4964_s18 + $0x88] ss:$48 sps:$4 sm:$0xff]   ;;  %v4524_v59 = vld [vmem:[%s4964_s18 + $0xe0] ss:$48 sps:$4 sm:$0xff]  }
  0x79   : > { %3940 = vmatpush3.bf16.msra.mxu1 %v4447_v60  ;;  %3901 = vmatprep.subr.bf16.mxu0 %v4448_v61  ;;  %v4525_v60 = vld [vmem:[%s4964_s18 + $0xe8] ss:$48 sps:$4 sm:$0xff]   ;;  %v4526_v61 = vld [vmem:[%s4964_s18 + $0x144] ss:$48 sps:$4 sm:$0xff]  }
  0x7a   : > { %3941 = vmatprep.subr.bf16.mxu1 %v4449_v62  ;;  %1728 = vmatprep.mubr.bf16.mxu0 %v4454_v2  ;;  %v4528_v62 = vld [vmem:[%s4964_s18 + $0x14c] ss:$48 sps:$4 sm:$0xff]  }
  0x7b   : > { %1793 = vmatprep.mubr.bf16.mxu1 %v4457_v4 }
  0x7c   : > { %3902 = vmatpush3.bf16.msra.mxu0 %v4450_v63  ;;  %v4530_v63 = vld [vmem:[%s4964_s18 + $0x140] ss:$48 sps:$4 sm:$0xff]  }
  0x7d   : > { %3942 = vmatpush3.bf16.msra.mxu1 %v4451_v0  ;;  %3967 = vmatprep.subr.bf16.mxu0 %v4458_v5  ;;  %v4531_v0 = vld [vmem:[%s4964_s18 + $0x148] ss:$48 sps:$4 sm:$0xff]  }
  0x7e   : > { %4007 = vmatprep.subr.bf16.mxu1 %v4459_v6 }
  0x7f   : > { %1729 = vmatmul.mubr.bf16.vlgmr.msra.gmra.mrb[16].mxu0 %v4452_v1 }
  0x80   : > { %1794 = vmatmul.mubr.bf16.vlgmr.msra.gmra.mrb[16].mxu1 %v4455_v3  ;;  %3968 = vmatpush3.bf16.msra.mxu0 %v4460_v7 }
  0x81   : > { %4008 = vmatpush3.bf16.msra.mxu1 %v4461_v8  ;;  %3969 = vmatprep.subr.bf16.mxu0 %v4462_v9 }
  0x82   : > { %4009 = vmatprep.subr.bf16.mxu1 %v4463_v10  ;;  %1736 = vmatprep.mubr.bf16.mxu0 %v4466_v13 }
  0x83   : > { %1801 = vmatprep.mubr.bf16.mxu1 %v4468_v14 }
  0x84   : > { %3970 = vmatpush3.bf16.msra.mxu0 %v4464_v11 }
  0x85   : > { %4010 = vmatpush3.bf16.msra.mxu1 %v4465_v12  ;;  %3971 = vmatprep.subr.bf16.mxu0 %v4472_v17 }
  0x86   : > { %4011 = vmatprep.subr.bf16.mxu1 %v4473_v18 }
  0x87   : > { %1737 = vmatmul.mubr.bf16.gmra.mrb[20].mxu0 %v4470_v15 }
  0x88   : > { %1802 = vmatmul.mubr.bf16.gmra.mrb[20].mxu1 %v4471_v16  ;;  %3972 = vmatpush3.bf16.msra.mxu0 %v4474_v19 }
  0x89   : > { %4012 = vmatpush3.bf16.msra.mxu1 %v4475_v20  ;;  %3973 = vmatprep.subr.bf16.mxu0 %v4476_v21 }
  0x8a   : > { %4013 = vmatprep.subr.bf16.mxu1 %v4477_v22  ;;  %1744 = vmatprep.mubr.bf16.mxu0 %v4480_v25 }
  0x8b   : > { %1809 = vmatprep.mubr.bf16.mxu1 %v4482_v26 }
  0x8c   : > { %3974 = vmatpush3.bf16.msra.mxu0 %v4478_v23 }
  0x8d   : > { %4014 = vmatpush3.bf16.msra.mxu1 %v4479_v24  ;;  %3975 = vmatprep.subr.bf16.mxu0 %v4486_v29 }
  0x8e   : > { %4015 = vmatprep.subr.bf16.mxu1 %v4487_v30 }
  0x8f   : > { %1745 = vmatmul.mubr.bf16.gmra.mrb[24].mxu0 %v4484_v27 }
  0x90   : > { %1810 = vmatmul.mubr.bf16.gmra.mrb[24].mxu1 %v4485_v28  ;;  %3976 = vmatpush3.bf16.msra.mxu0 %v4488_v31 }
  0x91   : > { %4016 = vmatpush3.bf16.msra.mxu1 %v4489_v32  ;;  %3977 = vmatprep.subr.bf16.mxu0 %v4490_v33 }
  0x92   : > { %4017 = vmatprep.subr.bf16.mxu1 %v4491_v34  ;;  %1752 = vmatprep.mubr.bf16.mxu0 %v4494_v37 }
  0x93   : > { %1817 = vmatprep.mubr.bf16.mxu1 %v4496_v38 }
  0x94   : > { %3978 = vmatpush3.bf16.msra.mxu0 %v4492_v35 }
  0x95   : > { %4018 = vmatpush3.bf16.msra.mxu1 %v4493_v36  ;;  %3979 = vmatprep.subr.bf16.mxu0 %v4500_v41 }
  0x96   : > { %4019 = vmatprep.subr.bf16.mxu1 %v4501_v42 }
  0x97   : > { %1753 = vmatmul.mubr.bf16.gmra.mrb[28].mxu0 %v4498_v39 }
  0x98   : > { %1818 = vmatmul.mubr.bf16.gmra.mrb[28].mxu1 %v4499_v40  ;;  %3980 = vmatpush3.bf16.msra.mxu0 %v4502_v43 }
  0x99   : > { %4020 = vmatpush3.bf16.msra.mxu1 %v4503_v44  ;;  %3981 = vmatprep.subr.bf16.mxu0 %v4504_v45 }
  0x9a   : > { %4021 = vmatprep.subr.bf16.mxu1 %v4505_v46  ;;  %1858 = vmatprep.mubr.bf16.mxu0 %v4510_v50 }
  0x9b   : > { %1923 = vmatprep.mubr.bf16.mxu1 %v4513_v52 }
  0x9c   : > { %3982 = vmatpush3.bf16.msra.mxu0 %v4506_v47 }
  0x9d   : > { %4022 = vmatpush3.bf16.msra.mxu1 %v4507_v48 }
  0x9f   : > { %1859 = vmatmul.mubr.bf16.vlgmr.msra.gmra.mrb[32].mxu0 %v4508_v49 }
  0xa0   : > { %1924 = vmatmul.mubr.bf16.vlgmr.msra.gmra.mrb[32].mxu1 %v4511_v51  ;;  %1866 = vmatprep.mubr.bf16.mxu0 %v4514_v53 }
  0xa1   : > { %1931 = vmatprep.mubr.bf16.mxu1 %v4516_v54 }
  0xa7   : > { %1867 = vmatmul.mubr.bf16.gmra.mrb[36].mxu0 %v4518_v55 }
  0xa8   : > { %1932 = vmatmul.mubr.bf16.gmra.mrb[36].mxu1 %v4519_v56  ;;  %1874 = vmatprep.mubr.bf16.mxu0 %v4520_v57 }
  0xa9   : > { %1939 = vmatprep.mubr.bf16.mxu1 %v4522_v58 }
  0xaf   : > { %1875 = vmatmul.mubr.bf16.gmra.mrb[40].mxu0 %v4524_v59 }
  0xb0   : > { %1940 = vmatmul.mubr.bf16.gmra.mrb[40].mxu1 %v4525_v60  ;;  %1882 = vmatprep.mubr.bf16.mxu0 %v4526_v61 }
  0xb1   : > { %1947 = vmatprep.mubr.bf16.mxu1 %v4528_v62 }
  0xb7   : > { %1883 = vmatmul.mubr.bf16.gmra.mrb[44].mxu0 %v4530_v63 }
  0xb8   : > { %1948 = vmatmul.mubr.bf16.gmra.mrb[44].mxu1 %v4531_v0 }
 0x132   : > { %v3823_v1 = vpop.f32.mrb[0].mxu0 }
 0x133   : > { %v3863_v2 = vpop.f32.mrb[0].mxu1  ;;  %v3824_v3 = vpop.f32.mrb[1].mxu0 }
 0x134   : > { %v3825_v4 = vadd.f32 %v3824_v3, %v3823_v1  ;;  %v3864_v5 = vpop.f32.mrb[1].mxu1  ;;  %v3826_v6 = vpop.f32.mrb[2].mxu0 }
 0x135   : > { %v3865_v7 = vadd.f32 %v3864_v5, %v3863_v2  ;;  %v3866_v8 = vpop.f32.mrb[2].mxu1  ;;  %v3827_v9 = vpop.f32.mrb[3].mxu0 }
 0x136   : > { %v3828_v10 = vadd.f32 %v3827_v9, %v3826_v6  ;;  %v3867_v11 = vpop.f32.mrb[3].mxu1 }
 0x137   : > { %v1666_v12 = vadd.f32 %v3865_v7, %v3825_v4  ;;  %v3868_v13 = vadd.f32 %v3867_v11, %v3866_v8 }
 0x139   : > { %v1669_v14 = vadd.f32 %v3868_v13, %v3828_v10 }
 0x13a   : > { %v3829_v15 = vpop.f32.mrb[4].mxu0 }
 0x13b   : > { %v3869_v16 = vpop.f32.mrb[4].mxu1  ;;  %v3830_v17 = vpop.f32.mrb[5].mxu0 }
 0x13c   : > { %v3831_v18 = vadd.f32 %v3830_v17, %v3829_v15  ;;  %v3870_v19 = vpop.f32.mrb[5].mxu1  ;;  %v3832_v20 = vpop.f32.mrb[6].mxu0 }
 0x13d   : > { %v3871_v21 = vadd.f32 %v3870_v19, %v3869_v16  ;;  %v3872_v22 = vpop.f32.mrb[6].mxu1  ;;  %v3833_v23 = vpop.f32.mrb[7].mxu0 }
 0x13e   : > { %v3834_v24 = vadd.f32 %v3833_v23, %v3832_v20  ;;  %v3873_v25 = vpop.f32.mrb[7].mxu1 }
 0x13f   : > { %v1674_v26 = vadd.f32 %v3871_v21, %v3831_v18  ;;  %v3874_v27 = vadd.f32 %v3873_v25, %v3872_v22 }
 0x141   : > { %v1677_v28 = vadd.f32 %v3874_v27, %v3834_v24 }
 0x142   : > { %v3835_v29 = vpop.f32.mrb[8].mxu0 }
 0x143   : > { %v3875_v30 = vpop.f32.mrb[8].mxu1  ;;  %v3836_v31 = vpop.f32.mrb[9].mxu0 }
 0x144   : > { %v3837_v32 = vadd.f32 %v3836_v31, %v3835_v29  ;;  %v3876_v33 = vpop.f32.mrb[9].mxu1  ;;  %v3838_v34 = vpop.f32.mrb[10].mxu0 }
 0x145   : > { %v3877_v35 = vadd.f32 %v3876_v33, %v3875_v30  ;;  %v3878_v36 = vpop.f32.mrb[10].mxu1  ;;  %v3839_v37 = vpop.f32.mrb[11].mxu0 }
 0x146   : > { %v3840_v38 = vadd.f32 %v3839_v37, %v3838_v34  ;;  %v3879_v39 = vpop.f32.mrb[11].mxu1 }
 0x147   : > { %v1682_v40 = vadd.f32 %v3877_v35, %v3837_v32  ;;  %v3880_v41 = vadd.f32 %v3879_v39, %v3878_v36 }
 0x149   : > { %v1685_v42 = vadd.f32 %v3880_v41, %v3840_v38 }
 0x14a   : > { %v3841_v43 = vpop.f32.mrb[12].mxu0 }
 0x14b   : > { %v3881_v44 = vpop.f32.mrb[12].mxu1  ;;  %v3842_v45 = vpop.f32.mrb[13].mxu0 }
 0x14c   : > { %v3882_v46 = vpop.f32.mrb[13].mxu1  ;;  %v3843_v47 = vadd.f32 %v3842_v45, %v3841_v43  ;;  %v3844_v49 = vpop.f32.mrb[14].mxu0 }
 0x14d   : > { %v3883_v48 = vadd.f32 %v3882_v46, %v3881_v44  ;;  %v3884_v50 = vpop.f32.mrb[14].mxu1  ;;  %v3845_v51 = vpop.f32.mrb[15].mxu0 }
 0x14e   : > { %v3885_v52 = vpop.f32.mrb[15].mxu1  ;;  %v3846_v54 = vadd.f32 %v3845_v51, %v3844_v49 }
 0x14f   : > { %v1690_v53 = vadd.f32 %v3883_v48, %v3843_v47  ;;  %v3886_v55 = vadd.f32 %v3885_v52, %v3884_v50 }
 0x151   : > { %v5111_v56 = vadd.f32 %v3886_v55, %v3846_v54 }
 0x152   : > { %v3903_v57 = vpop.f32.mrb[16].mxu0 }
 0x153   : > { %v3904_v58 = vpop.f32.mrb[17].mxu0  ;;  %v3943_v59 = vpop.f32.mrb[16].mxu1 }
 0x154   : > { %v3905_v60 = vadd.f32 %v3904_v58, %v3903_v57  ;;  %v3906_v61 = vpop.f32.mrb[18].mxu0  ;;  %v3944_v62 = vpop.f32.mrb[17].mxu1 }
 0x155   : > { %v3907_v63 = vpop.f32.mrb[19].mxu0  ;;  %v3945_v1 = vadd.f32 %v3944_v62, %v3943_v59  ;;  %v3946_v2 = vpop.f32.mrb[18].mxu1 }
 0x156   : > { %v1731_v0 = vadd.f32 %v3905_v60, %v1666_v12  ;;  %v3908_v3 = vadd.f32 %v3907_v63, %v3906_v61  ;;  %v3947_v4 = vpop.f32.mrb[19].mxu1 }
 0x157   : > { %v3948_v7 = vadd.f32 %v3947_v4, %v3946_v2 }
 0x158   : > { %v1796_v5 = vadd.f32 %v3945_v1, %v1731_v0  ;;  %v1734_v6 = vadd.f32 %v3908_v3, %v1669_v14 }
 0x15a   : > { %v5113_v8 = vadd.f32 %v3948_v7, %v1734_v6  ;;  %v3909_v9 = vpop.f32.mrb[20].mxu0  ;;  %v502_v7 = vld [vmem:[#allocation2] sm:$0xff] }
 0x15b   : > { %v3949_v10 = vpop.f32.mrb[20].mxu1  ;;  %v3910_v11 = vpop.f32.mrb[21].mxu0 }
 0x15c   : > { %v3911_v13 = vadd.f32 %v3910_v11, %v3909_v9  ;;  %v3950_v15 = vpop.f32.mrb[21].mxu1  ;;  %v3912_v16 = vpop.f32.mrb[22].mxu0 }
 0x15d   : > { %v3951_v17 = vadd.f32 %v3950_v15, %v3949_v10  ;;  %v3952_v18 = vpop.f32.mrb[22].mxu1  ;;  %v3913_v19 = vpop.f32.mrb[23].mxu0 }
 0x15e   : > { %v1739_v20 = vadd.f32 %v3911_v13, %v1674_v26  ;;  %v3914_v12 = vadd.f32 %v3913_v19, %v3912_v16  ;;  %v3953_v21 = vpop.f32.mrb[23].mxu1 }
 0x15f   : > { %v3954_v22 = vadd.f32 %v3953_v21, %v3952_v18 }
 0x160   : > { %v5115_v23 = vadd.f32 %v3951_v17, %v1739_v20  ;;  %v1742_v24 = vadd.f32 %v3914_v12, %v1677_v28 }
 0x162   : > { %v5117_v14 = vadd.f32 %v3954_v22, %v1742_v24  ;;  %v3915_v25 = vpop.f32.mrb[24].mxu0 }
 0x163   : > { %v3955_v27 = vpop.f32.mrb[24].mxu1  ;;  %v3916_v29 = vpop.f32.mrb[25].mxu0 }
 0x164   : > { %v3956_v30 = vpop.f32.mrb[25].mxu1  ;;  %v3917_v31 = vadd.f32 %v3916_v29, %v3915_v25  ;;  %v3918_v33 = vpop.f32.mrb[26].mxu0 }
 0x165   : > { %v3957_v32 = vadd.f32 %v3956_v30, %v3955_v27  ;;  %v3958_v34 = vpop.f32.mrb[26].mxu1  ;;  %v3919_v35 = vpop.f32.mrb[27].mxu0 }
 0x166   : > { %v3959_v36 = vpop.f32.mrb[27].mxu1  ;;  %v1747_v37 = vadd.f32 %v3917_v31, %v1682_v40  ;;  %v3920_v26 = vadd.f32 %v3919_v35, %v3918_v33  ;;  %v505_v33 = vld [vmem:[#allocation2 + $0x18] sm:$0xff] }
 0x167   : > { %v3960_v38 = vadd.f32 %v3959_v36, %v3958_v34 }
 0x168   : > { %v5119_v39 = vadd.f32 %v3957_v32, %v1747_v37  ;;  %v1750_v41 = vadd.f32 %v3920_v26, %v1685_v42 }
 0x16a   : > { %v5121_v43 = vadd.f32 %v3960_v38, %v1750_v41  ;;  %v3921_v28 = vpop.f32.mrb[28].mxu0 }
 0x16b   : > { %v3961_v44 = vpop.f32.mrb[28].mxu1  ;;  %v3922_v45 = vpop.f32.mrb[29].mxu0 }
 0x16c   : > { %v3923_v46 = vadd.f32 %v3922_v45, %v3921_v28  ;;  %v3962_v47 = vpop.f32.mrb[29].mxu1  ;;  %v3924_v48 = vpop.f32.mrb[30].mxu0 }
 0x16d   : > { %v3963_v49 = vadd.f32 %v3962_v47, %v3961_v44  ;;  %v3964_v50 = vpop.f32.mrb[30].mxu1  ;;  %v3925_v51 = vpop.f32.mrb[31].mxu0 }
 0x16e   : > { %v1755_v52 = vadd.f32 %v3923_v46, %v1690_v53  ;;  %v3926_v54 = vadd.f32 %v3925_v51, %v3924_v48  ;;  %v3965_v55 = vpop.f32.mrb[31].mxu1 }
 0x16f   : > { %v3966_v40 = vadd.f32 %v3965_v55, %v3964_v50 }
 0x170   : > { %v5123_v57 = vadd.f32 %v3963_v49, %v1755_v52  ;;  %v1758_v58 = vadd.f32 %v3926_v54, %v5111_v56  ;;  %v503_v56 = vld [vmem:[#allocation2 + $0x8] sm:$0xff] }
 0x171   : > { %v507_v54 = vld [vmem:[#allocation2 + $0x28] sm:$0xff] }
 0x172   : > { %v5126_v42 = vadd.f32 %v3966_v40, %v1758_v58  ;;  %v3983_v59 = vpop.f32.mrb[32].mxu0 }
 0x173   : > { %v4023_v60 = vpop.f32.mrb[32].mxu1  ;;  %v3984_v61 = vpop.f32.mrb[33].mxu0 }
 0x174   : > { %v3985_v62 = vadd.f32 %v3984_v61, %v3983_v59  ;;  %v4024_v63 = vpop.f32.mrb[33].mxu1  ;;  %v3986_v0 = vpop.f32.mrb[34].mxu0 }
 0x175   : > { %v4025_v1 = vadd.f32 %v4024_v63, %v4023_v60  ;;  %v4026_v2 = vpop.f32.mrb[34].mxu1  ;;  %v3987_v3 = vpop.f32.mrb[35].mxu0 }
 0x176   : > { %v1861_v4 = vadd.f32 %v3985_v62, %v1796_v5  ;;  %v3988_v53 = vadd.f32 %v3987_v3, %v3986_v0  ;;  %v4027_v6 = vpop.f32.mrb[35].mxu1 }
 0x177   : > { %v4028_v9 = vadd.f32 %v4027_v6, %v4026_v2 }
 0x178   : > { %v1926_v10 = vadd.f32 %v4025_v1, %v1861_v4  ;;  %v1864_v11 = vadd.f32 %v3988_v53, %v5113_v8  ;;  %v504_v8 = vld [vmem:[#allocation2 + $0x10] sm:$0xff] }
 0x17a   : > { %v1956_v13 = vadd.f32 %v1926_v10, %v502_v7  ;;  %v1929_v15 = vadd.f32 %v4028_v9, %v1864_v11  ;;  %v3989_v16 = vpop.f32.mrb[36].mxu0  ;;  %v509_v10 = vld [vmem:[#allocation2 + $0x38] sm:$0xff] }
 0x17b   : > { %v4029_v17 = vpop.f32.mrb[36].mxu1  ;;  %v3990_v18 = vpop.f32.mrb[37].mxu0 }
 0x17c   : > { %1964 = vst [vmem:[#allocation2] sm:$0xff] %v1956_v13  ;;  %v1957_v19 = vadd.f32 %v1929_v15, %v503_v56  ;;  %v3991_v20 = vadd.f32 %v3990_v18, %v3989_v16  ;;  %v4030_v12 = vpop.f32.mrb[37].mxu1  ;;  %v3992_v21 = vpop.f32.mrb[38].mxu0 }
 0x17d   : > { %v4031_v22 = vadd.f32 %v4030_v12, %v4029_v17  ;;  %v4032_v5 = vpop.f32.mrb[38].mxu1  ;;  %v3993_v24 = vpop.f32.mrb[39].mxu0  ;;  %v4758_v17 = vmov (!%p3733_p11), 0.0  }
 0x17e   : > { %1965 = vst [vmem:[#allocation2 + $0x8] sm:$0xff] %v1957_v19  ;;  %v1869_v25 = vadd.f32 %v3991_v20, %v5115_v23  ;;  %v3994_v27 = vadd.f32 %v3993_v24, %v3992_v21  ;;  %v4033_v29 = vpop.f32.mrb[39].mxu1  ;;  %4061 = vmatprep.subr.bf16.mxu1 (!%p3733_p11), %v4758_v17  ;;  %4069 = vmatprep.mubr.msk.bf16.mxu1 (!%p3733_p11), %vm4759_vm0, %v4758_v17 }
 0x17f   : > { %v4034_v30 = vadd.f32 %v4033_v29, %v4032_v5 }
 0x180   : > { %v1934_v31 = vadd.f32 %v4031_v22, %v1869_v25  ;;  %v1872_v32 = vadd.f32 %v3994_v27, %v5117_v14  ;;  %v506_v14 = vld [vmem:[#allocation2 + $0x20] sm:$0xff] }
 0x182   : > { %v1958_v34 = vadd.f32 %v1934_v31, %v504_v8  ;;  %v1937_v35 = vadd.f32 %v4034_v30, %v1872_v32  ;;  %v3995_v36 = vpop.f32.mrb[40].mxu0 }
 0x183   : > { %v4035_v37 = vpop.f32.mrb[40].mxu1  ;;  %v3996_v26 = vpop.f32.mrb[41].mxu0  ;;  %v1976_v15 = vld [vmem:[#allocation2] sm:$0xff] (!%p3733_p11) }
 0x184   : > { %1966 = vst [vmem:[#allocation2 + $0x10] sm:$0xff] %v1958_v34  ;;  %v1959_v38 = vadd.f32 %v1937_v35, %v505_v33  ;;  %v3997_v41 = vadd.f32 %v3996_v26, %v3995_v36  ;;  %v4036_v28 = vpop.f32.mrb[41].mxu1  ;;  %v3998_v44 = vpop.f32.mrb[42].mxu0 }
 0x185   : > { %v4037_v45 = vadd.f32 %v4036_v28, %v4035_v37  ;;  %v4038_v23 = vpop.f32.mrb[42].mxu1  ;;  %v3999_v46 = vpop.f32.mrb[43].mxu0  ;;  %v1977_v16 = vld [vmem:[#allocation2 + $0x8] sm:$0xff] (!%p3733_p11) }
 0x186   : > { %1967 = vst [vmem:[#allocation2 + $0x18] sm:$0xff] %v1959_v38  ;;  %v1877_v47 = vadd.f32 %v3997_v41, %v5119_v39  ;;  %v4000_v48 = vadd.f32 %v3999_v46, %v3998_v44  ;;  %v4039_v49 = vpop.f32.mrb[43].mxu1  ;;  %v4536_v38 = vld [vmem:[%s5771_s4 + $0xc] ss:$16 sps:$4 sm:$0xff] (!%p3733_p11)   ;;  %v4538_v41 = vld [vmem:[%s5771_s4 + $0x8] ss:$16 sps:$4 sm:$0xff] (!%p3733_p11)  }
 0x187   : > { %v4040_v50 = vadd.f32 %v4039_v49, %v4038_v23  ;;  %2369 = vmatprep.subr.bf16.mxu0 (!%p3733_p11), %v4536_v38  ;;  %v4542_v28 = vld [vmem:[%s5771_s4 + $0x2c] ss:$16 sps:$4 sm:$0xff] (!%p3733_p11)   ;;  %v4544_v44 = vld [vmem:[%s5771_s4 + $0x28] ss:$16 sps:$4 sm:$0xff] (!%p3733_p11)   ;;  %v4571_v38 = vld [vmem:[%s5771_s4 + $0xc4] ss:$16 sps:$4 sm:$0xff] (!%p3733_p11)  }
 0x188   : > { %v1942_v51 = vadd.f32 %v4037_v45, %v1877_v47  ;;  %v1880_v52 = vadd.f32 %v4000_v48, %v5121_v43  ;;  %v508_v43 = vld [vmem:[#allocation2 + $0x30] sm:$0xff]  ;;  %2370 = vmatpush1.bf16.msra.mxu0 (!%p3733_p11), %v4538_v41  ;;  %v4548_v45 = vld [vmem:[%s5771_s4 + $0x4c] ss:$16 sps:$4 sm:$0xff] (!%p3733_p11)   ;;  %v4550_v46 = vld [vmem:[%s5771_s4 + $0x48] ss:$16 sps:$4 sm:$0xff] (!%p3733_p11)  }
 0x189   : > { %2371 = vmatprep.subr.bf16.mxu0 (!%p3733_p11), %v4542_v28  ;;  %v4554_v49 = vld [vmem:[%s5771_s4 + $0x6c] ss:$16 sps:$4 sm:$0xff] (!%p3733_p11)   ;;  %v4569_v41 = vld [vmem:[%s5771_s4 + $0xc0] ss:$16 sps:$4 sm:$0xff] (!%p3733_p11)   ;;  %v4577_v28 = vld [vmem:[%s5771_s4 + $0xe4] ss:$16 sps:$4 sm:$0xff] (!%p3733_p11)  }
 0x18a   : > { %v1960_v55 = vadd.f32 %v1942_v51, %v506_v14  ;;  %v1945_v40 = vadd.f32 %v4040_v50, %v1880_v52  ;;  %v4001_v58 = vpop.f32.mrb[44].mxu0 }
 0x18b   : > { %v4041_v59 = vpop.f32.mrb[44].mxu1  ;;  %v4002_v60 = vpop.f32.mrb[45].mxu0  ;;  %v1978_v19 = vld [vmem:[#allocation2 + $0x10] sm:$0xff] (!%p3733_p11) }
 0x18c   : > { %1968 = vst [vmem:[#allocation2 + $0x20] sm:$0xff] %v1960_v55  ;;  %v1961_v61 = vadd.f32 %v1945_v40, %v507_v54  ;;  %v4003_v62 = vadd.f32 %v4002_v60, %v4001_v58  ;;  %v4042_v63 = vpop.f32.mrb[45].mxu1  ;;  %v4004_v0 = vpop.f32.mrb[46].mxu0  ;;  %2372 = vmatpush1.bf16.msra.mxu0 (!%p3733_p11), %v4544_v44  ;;  %v4556_v40 = vld [vmem:[%s5771_s4 + $0x68] ss:$16 sps:$4 sm:$0xff] (!%p3733_p11)  }
 0x18d   : > { %v4043_v1 = vadd.f32 %v4042_v63, %v4041_v59  ;;  %v4044_v39 = vpop.f32.mrb[46].mxu1  ;;  %v4005_v2 = vpop.f32.mrb[47].mxu0  ;;  %v1979_v20 = vld [vmem:[#allocation2 + $0x18] sm:$0xff] (!%p3733_p11)  ;;  %2373 = vmatprep.subr.bf16.mxu0 (!%p3733_p11), %v4548_v45  ;;  %v4575_v45 = vld [vmem:[%s5771_s4 + $0xe0] ss:$16 sps:$4 sm:$0xff] (!%p3733_p11)  }
 0x18e   : > { %1969 = vst [vmem:[#allocation2 + $0x28] sm:$0xff] %v1961_v61  ;;  %v1885_v3 = vadd.f32 %v4003_v62, %v5123_v57  ;;  %v4006_v4 = vadd.f32 %v4005_v2, %v4004_v0  ;;  %v4045_v53 = vpop.f32.mrb[47].mxu1  ;;  %v3734_v57 = vld [vmem:[%s5769_s2] ss:$0 sm:$0xff] (!%p3733_p11)  ;;  %v4560_v60 = vld [vmem:[%s5771_s4 + $0x8c] ss:$16 sps:$4 sm:$0xff] (!%p3733_p11)  }
 0x18f   : > { %v4046_v6 = vadd.f32 %v4045_v53, %v4044_v39  ;;  %v5140_v18 = vadd.f32 (!%p3733_p11), %v3734_v57, %v1976_v15  ;;  %v5146_v21 = vadd.f32 (!%p3733_p11), %v3734_v57, %v1978_v19  ;;  %v5148_v22 = vadd.f32 (!%p3733_p11), %v3734_v57, %v1979_v20  ;;  %v4562_v39 = vld [vmem:[%s5771_s4 + $0x88] ss:$16 sps:$4 sm:$0xff] (!%p3733_p11)   ;;  %v4566_v2 = vld [vmem:[%s5771_s4 + $0xac] ss:$16 sps:$4 sm:$0xff] (!%p3733_p11)  }
 0x190   : > { %v1950_v7 = vadd.f32 %v4043_v1, %v1885_v3  ;;  %v1888_v9 = vadd.f32 %v4006_v4, %v5126_v42  ;;  %1975 = sbr.rel (%p3733_p11) target bundleno = 6562 (0x19a2), region = 87  ;;  %v5142_v42 = vadd.f32 (!%p3733_p11), %v3734_v57, %v1977_v16  ;;  %2374 = vmatpush1.bf16.msra.mxu0 (!%p3733_p11), %v4550_v46  ;;  %v4568_v3 = vld [vmem:[%s5771_s4 + $0xa8] ss:$16 sps:$4 sm:$0xff] (!%p3733_p11)   ;;  %v4572_v4 = vld [vmem:[%s5771_s4 + $0xcc] ss:$16 sps:$4 sm:$0xff] (!%p3733_p11)   ;;  %v4760_v46 = vmov (!%p3733_p11), 0  }
 0x191   : > { %v3735_v29 = vmul.f32 (!%p3733_p11), -1.442695, %v5140_v18  ;;  %v3737_v32 = vmul.f32 (!%p3733_p11), -1.442695, %v5146_v21  ;;  %v3738_v33 = vmul.f32 (!%p3733_p11), -1.442695, %v5148_v22  ;;  %2375 = vmatprep.subr.bf16.mxu0 (!%p3733_p11), %v4554_v49  ;;  %2401 = vmatprep.mubr.bf16.mxu0 (!%p3733_p11), %v4760_v46 }
 0x192   : > { %v1962_v11 = vadd.f32 %v1950_v7, %v508_v43  ;;  %v1953_v56 = vadd.f32 %v4046_v6, %v1888_v9  ;;  %v3736_v8 = vmul.f32 (!%p3733_p11), -1.442695, %v5142_v42  ;;  %v4578_v44 = vld [vmem:[%s5771_s4 + $0xec] ss:$16 sps:$4 sm:$0xff] (!%p3733_p11)  }
 0x193   : > { %v1980_v12 = vld [vmem:[#allocation2 + $0x20] sm:$0xff] (!%p3733_p11)  ;;  %4589 = vpow2.f32 (!%p3733_p11), %v3735_v29 }
 0x194   : > { %1970 = vst [vmem:[#allocation2 + $0x30] sm:$0xff] %v1962_v11  ;;  %v1963_v13 = vadd.f32 %v1953_v56, %v509_v10  ;;  %v5150_v24 = vadd.f32 (!%p3733_p11), %v3734_v57, %v1980_v12  ;;  %4591 = vpow2.f32 (!%p3733_p11), %v3736_v8  ;;  %2376 = vmatpush1.bf16.msra.mxu0 (!%p3733_p11), %v4556_v40  ;;  %v4574_v56 = vld [vmem:[%s5771_s4 + $0xc8] ss:$16 sps:$4 sm:$0xff] (!%p3733_p11)   ;;  %v4533_v29 = vld [vmem:[%s5771_s4] ss:$16 sps:$4 sm:$0xff] (!%p3733_p11)  }
 0x195   : > { %v1981_v5 = vld [vmem:[#allocation2 + $0x28] sm:$0xff] (!%p3733_p11)  ;;  %4593 = vpow2.f32 (!%p3733_p11), %v3737_v32  ;;  %2377 = vmatprep.subr.bf16.mxu0 (!%p3733_p11), %v4560_v60  ;;  %v4541_v8 = vld [vmem:[%s5771_s4 + $0x24] ss:$16 sps:$4 sm:$0xff] (!%p3733_p11)   ;;  %v4545_v32 = vld [vmem:[%s5771_s4 + $0x40] ss:$16 sps:$4 sm:$0xff] (!%p3733_p11)  }
 0x196   : > { %1971 = vst [vmem:[#allocation2 + $0x38] sm:$0xff] %v1963_v13  ;;  %v5154_v30 = vadd.f32 (!%p3733_p11), %v3734_v57, %v1981_v5  ;;  %v3739_v35 = vmul.f32 (!%p3733_p11), -1.442695, %v5150_v24  ;;  %4595 = vpow2.f32 (!%p3733_p11), %v3738_v33  ;;  %v4553_v33 = vld [vmem:[%s5771_s4 + $0x64] ss:$16 sps:$4 sm:$0xff] (!%p3733_p11)  }
 0x197   : > { %v2144_v40 = vld [vmem:[%s5772_s5] sm:$0xf] }
 0x198   : > { %v3740_v36 = vmul.f32 -1.442695, %v5154_v30  ;;  %4597 = vpow2.f32 %v3739_v35  ;;  %2378 = vmatpush1.bf16.msra.mxu0 %v4562_v39  ;;  %v4559_v35 = vld [vmem:[%s5771_s4 + $0x84] ss:$16 sps:$4 sm:$0xff]  }
 0x199   : > { %2379 = vmatprep.subr.bf16.mxu0 %v4566_v2 }
 0x19a   : > { %4599 = vpow2.f32 %v3740_v36  ;;  %v4557_v36 = vld [vmem:[%s5771_s4 + $0x80] ss:$16 sps:$4 sm:$0xff]  }
 0x19b   : > { %v1982_v25 = vld [vmem:[#allocation2 + $0x30] sm:$0xff] }
 0x19c   : > { %v5156_v31 = vadd.f32 %v3734_v57, %v1982_v25  ;;  %2380 = vmatpush1.bf16.msra.mxu0 %v4568_v3 }
 0x19d   : > { %v1983_v27 = vld [vmem:[#allocation2 + $0x38] sm:$0xff]  ;;  %v4590_v23 = vpop.eup %4589  ;;  %2381 = vmatprep.subr.bf16.mxu0 %v4572_v4 }
 0x19e   : > { %v5160_v34 = vadd.f32 %v3734_v57, %v1983_v27  ;;  %v3741_v37 = vmul.f32 -1.442695, %v5156_v31  ;;  %v4592_v47 = vpop.eup %4591  ;;  %v2023_v48 = vadd.f32 1.0, %v4590_v23  ;;  %v4532_v27 = vld [vmem:[%s5770_s3] sm:$0xff]   ;;  %v4580_v23 = vld [vmem:[%s5771_s4 + $0xe8] ss:$16 sps:$4 sm:$0xff]  }
 0x19f   : > { %v4594_v14 = vpop.eup %4593  ;;  %v2024_v50 = vadd.f32 1.0, %v4592_v47 }
 0x1a0   : > { %v3742_v26 = vmul.f32 -1.442695, %v5160_v34  ;;  %4601 = vpow2.f32 %v3741_v37  ;;  %v4596_v51 = vpop.eup %4595  ;;  %v2025_v52 = vadd.f32 1.0, %v4594_v14  ;;  %2382 = vmatpush1.bf16.msra.mxu0 %v4574_v56  ;;  %v4565_v37 = vld [vmem:[%s5771_s4 + $0xa4] ss:$16 sps:$4 sm:$0xff]  }
 0x1a1   : > { %v2026_v55 = vadd.f32 1.0, %v4596_v51  ;;  %2383 = vmatprep.subr.bf16.mxu0 %v4578_v44  ;;  %v2146_v51 = vlaneseq }
 0x1a2   : > { %4603 = vpow2.f32 %v3742_v26  ;;  %v4598_v54 = vpop.eup %4597  ;;  %v4563_v26 = vld [vmem:[%s5771_s4 + $0xa0] ss:$16 sps:$4 sm:$0xff]  }
 0x1a3   : > { %4605 = vrcp.f32 %v2023_v48  ;;  %v2027_v59 = vadd.f32 1.0, %v4598_v54 }
 0x1a4   : > { %4607 = vrcp.f32 %v2024_v50  ;;  %v4600_v58 = vpop.eup %4599  ;;  %2384 = vmatpush1.bf16.msra.mxu0 %v4580_v23 }
 0x1a5   : > { %4609 = vrcp.f32 %v2025_v52  ;;  %v2028_v62 = vadd.f32 1.0, %v4600_v58  ;;  %v2147_v52 = vshrl.u32 %v2146_v51, 7 }
 0x1a6   : > { %4611 = vrcp.f32 %v2026_v55 }
 0x1a7   : > { %4613 = vrcp.f32 %v2027_v59  ;;  %v2148_v54 = vsub.s32 0, %v2147_v52  ;;  %v2156_v55 = vsub.s32 2, %v2147_v52  ;;  %v2152_v58 = vsub.s32 1, %v2147_v52 }
 0x1a8   : > { %4615 = vrcp.f32 %v2028_v62  ;;  %v2160_v59 = vsub.s32 3, %v2147_v52 }
 0x1a9   : > { %v2149_v60 = vrot.slane %v2144_v40, %v2148_v54  ;;  %v2153_v62 = vrot.slane %v2144_v40, %v2152_v58 }
 0x1aa   : > { %v4602_v61 = vpop.eup %4601 }
 0x1ab   : > { %v2029_v0 = vadd.f32 1.0, %v4602_v61  ;;  %v2157_v61 = vrot.slane %v2144_v40, %v2156_v55 }
 0x1ac   : > { %v4604_v63 = vpop.eup %4603 }
 0x1ad   : > { %v2030_v1 = vadd.f32 1.0, %v4604_v63  ;;  %4617 = vrcp.f32 %v2029_v0  ;;  %v4606_v53 = vpop.eup %4605  ;;  %v2161_v63 = vrot.slane %v2144_v40, %v2160_v59 }
 0x1ae   : > { %v4608_v43 = vpop.eup %4607  ;;  %v2047_v6 = vmul.f32 %v4606_v53, %v5140_v18 }
 0x1af   : > { %4619 = vrcp.f32 %v2030_v1  ;;  %v4610_v7 = vpop.eup %4609  ;;  %v2048_v9 = vmul.f32 %v4608_v43, %v5142_v42 }
 0x1b0   : > { %v4612_v10 = vpop.eup %4611  ;;  %v2049_v11 = vmul.f32 %v4610_v7, %v5146_v21 }
 0x1b1   : > { %v4614_v13 = vpop.eup %4613  ;;  %v2057_v15 = vpack.c.bf16 %v2048_v9, %v2047_v6  ;;  %v2050_v16 = vmul.f32 %v4612_v10, %v5148_v22 }
 0x1b2   : > { %v4616_v57 = vpop.eup %4615  ;;  %v2051_v20 = vmul.f32 %v4614_v13, %v5150_v24  ;;  %v4535_v24 = vld [vmem:[%s5771_s4 + $0x4] ss:$16 sps:$4 sm:$0xff]  }
 0x1b3   : > { %4062 = vmatpush3.bf16.msra.mxu1 %v2057_v15  ;;  %v2058_v18 = vpack.c.bf16 %v2050_v16, %v2049_v11  ;;  %v2052_v42 = vmul.f32 %v4616_v57, %v5154_v30  ;;  %v4539_v30 = vld [vmem:[%s5771_s4 + $0x20] ss:$16 sps:$4 sm:$0xff]  }
 0x1b4   : > { %4063 = vmatprep.subr.bf16.mxu1 %v4758_v17 }
 0x1b5   : > { %v2059_v21 = vpack.c.bf16 %v2052_v42, %v2051_v20 }
 0x1b7   : > { %v4618_v19 = vpop.eup %4617  ;;  %4064 = vmatpush3.bf16.msra.mxu1 %v2058_v18 }
 0x1b8   : > { %v2053_v5 = vmul.f32 %v4618_v19, %v5156_v31  ;;  %4065 = vmatprep.subr.bf16.mxu1 %v4758_v17  ;;  %v4547_v31 = vld [vmem:[%s5771_s4 + $0x44] ss:$16 sps:$4 sm:$0xff]  }
 0x1b9   : > { %v4620_v12 = vpop.eup %4619 }
 0x1ba   : > { %v2054_v25 = vmul.f32 %v4620_v12, %v5160_v34  ;;  %v4551_v34 = vld [vmem:[%s5771_s4 + $0x60] ss:$16 sps:$4 sm:$0xff]  }
 0x1bb   : > { %4066 = vmatpush3.bf16.msra.mxu1 %v2059_v21 }
 0x1bc   : > { %v2060_v22 = vpack.c.bf16 %v2054_v25, %v2053_v5  ;;  %4067 = vmatprep.subr.bf16.mxu1 %v4758_v17 }
 0x1bf   : > { %4068 = vmatpush3.bf16.msra.mxu1 %v2060_v22 }
 0x1c0   : > { %2326 = vmatprep.subr.bf16.mxu1 %v4535_v24 }
 0x1c2   : > { %4070 = vmatmul.mubr.msk.bf16.vlgmr.msra.gmra.mrb[0].mxu1 %vm2066_vm1, %v4532_v27 }
 0x1c3   : > { %2327 = vmatpush1.bf16.msra.mxu1 %v4533_v29  ;;  %2358 = vmatprep.mubr.bf16.mxu1 %v4760_v46 }
 0x1c4   : > { %2328 = vmatprep.subr.bf16.mxu1 %v4541_v8 }
 0x1c7   : > { %2329 = vmatpush1.bf16.msra.mxu1 %v4539_v30 }
 0x1c8   : > { %2330 = vmatprep.subr.bf16.mxu1 %v4547_v31 }
 0x1cb   : > { %2331 = vmatpush1.bf16.msra.mxu1 %v4545_v32 }
 0x1cc   : > { %2332 = vmatprep.subr.bf16.mxu1 %v4553_v33 }
 0x1cf   : > { %2333 = vmatpush1.bf16.msra.mxu1 %v4551_v34 }
 0x1d0   : > { %2334 = vmatprep.subr.bf16.mxu1 %v4559_v35 }
 0x1d3   : > { %2335 = vmatpush1.bf16.msra.mxu1 %v4557_v36 }
 0x1d4   : > { %2336 = vmatprep.subr.bf16.mxu1 %v4565_v37 }
 0x1d7   : > { %2337 = vmatpush1.bf16.msra.mxu1 %v4563_v26 }
 0x1d8   : > { %2338 = vmatprep.subr.bf16.mxu1 %v4571_v38 }
 0x1db   : > { %2339 = vmatpush1.bf16.msra.mxu1 %v4569_v41 }
 0x1dc   : > { %2340 = vmatprep.subr.bf16.mxu1 %v4577_v28 }
 0x1df   : > { %2341 = vmatpush1.bf16.msra.mxu1 %v4575_v45 }
 0x295   : > { %v2104_v47 = vpop.f32.mrb[0].mxu1 }
 0x296   : > { %v4071_v48 = vpop.f32.mrb[1].mxu1 }
 0x297   : > { %v2107_v49 = vpop.f32.mrb[2].mxu1 }
 0x298   : > { %v2111_v14 = vpack.c.bf16 %v2107_v49, %v2104_v47  ;;  %v4072_v50 = vpop.f32.mrb[3].mxu1 }
 0x29a   : > { %2359 = vmatmul.mubr.bf16.vlgmr.msra.gmra.mrb[4].mxu1 %v2111_v14  ;;  %2402 = vmatmul.mubr.bf16.vlgmr.msra.gmra.mrb[0].mxu0 %v2111_v14 }
 0x29b   : > { %2570 = vmatprep.mubr.f32.mxu1 %v4758_v17  ;;  %2690 = vmatprep.mubr.f32.mxu0 %v4758_v17 }
 0x36d   : > { %v2360_v0 = vpop.f32.mrb[4].mxu1  ;;  %v2403_v1 = vpop.f32.mrb[0].mxu0 }
 0x36e   : > { %v2361_v39 = vadd.f32 %v2360_v0, %v2149_v60  ;;  %v2404_v2 = vadd.f32 %v2403_v1, %v2157_v61  ;;  %v2362_v3 = vpop.f32.mrb[5].mxu1  ;;  %v2405_v4 = vpop.f32.mrb[1].mxu0 }
 0x36f   : > { %v2363_v53 = vadd.f32 %v2362_v3, %v2153_v62  ;;  %v2406_v43 = vadd.f32 %v2405_v4, %v2161_v63  ;;  %v2364_v6 = vpop.f32.mrb[6].mxu1  ;;  %v2407_v7 = vpop.f32.mrb[2].mxu0  ;;  %v2415_v3 = vld [vmem:[%s5773_s6 + $0x18] sm:$0xff]  ;;  %v2412_v4 = vld [vmem:[%s5773_s6] sm:$0xff] }
 0x370   : > { %v2365_v9 = vadd.f32 %v2364_v6, %v2149_v60  ;;  %v2408_v10 = vadd.f32 %v2407_v7, %v2157_v61  ;;  %v2366_v11 = vpop.f32.mrb[7].mxu1  ;;  %v2409_v56 = vpop.f32.mrb[3].mxu0  ;;  %v2485_v13 = vrot.slane %v2361_v39, 2  ;;  %v2609_v15 = vrot.slane %v2361_v39, 4  ;;  %v2417_v6 = vld [vmem:[%s5773_s6 + $0x28] sm:$0xff]  ;;  %v2419_v7 = vld [vmem:[%s5773_s6 + $0x38] sm:$0xff] }
 0x371   : > { %v2367_v16 = vadd.f32 %v2366_v11, %v2153_v62  ;;  %v2410_v57 = vadd.f32 %v2409_v56, %v2161_v63  ;;  %v2486_v19 = vrot.slane %v2363_v53, 2  ;;  %v2610_v18 = vrot.slane %v2363_v53, 4  ;;  %v2416_v11 = vld [vmem:[%s5773_s6 + $0x20] sm:$0xff]  ;;  %v2418_v56 = vld [vmem:[%s5773_s6 + $0x30] sm:$0xff] }
 0x372   : > { %v2446_v20 = vrot.slane %v2408_v10, 4  ;;  %v2489_v42 = vrot.slane %v2408_v10, 2  ;;  %v5283_v12 = vsel %vm2450_vm2, %v2609_v15, %v2408_v10  ;;  %v2729_v21 = vrot.slane %v2361_v39, 6  ;;  %v2423_v15 = vld [vmem:[%s5773_s6 + $0x58] sm:$0xff] }
 0x373   : > { %v2447_v5 = vrot.slane %v2410_v57, 4  ;;  %v2490_v25 = vrot.slane %v2410_v57, 2  ;;  %v5286_v22 = vsel %vm2450_vm2, %v2610_v18, %v2410_v57  ;;  %v2733_v24 = vrot.slane %v2408_v10, 6  ;;  %v2422_v18 = vld [vmem:[%s5773_s6 + $0x50] sm:$0xff] }
 0x374   : > { %v2451_v27 = vsel %vm2450_vm2, %v2361_v39, %v2446_v20  ;;  %v5290_v29 = vsel %vm2450_vm2, %v2485_v13, %v2489_v42  ;;  %v2730_v8 = vrot.slane %v2363_v53, 6  ;;  %v2734_v30 = vrot.slane %v2410_v57, 6  ;;  %v2421_v13 = vld [vmem:[%s5773_s6 + $0x48] sm:$0xff]  ;;  %v2427_v42 = vld [vmem:[%s5773_s6 + $0x78] sm:$0xff] }
 0x375   : > { %v5293_v31 = vsel %vm2450_vm2, %v2363_v53, %v2447_v5  ;;  %v5296_v32 = vsel %vm2450_vm2, %v2486_v19, %v2490_v25  ;;  %v5299_v33 = vsel %vm2450_vm2, %v2729_v21, %v2733_v24  ;;  %v2855_v35 = vrot.slane %v2404_v2, 4  ;;  %v2420_v19 = vld [vmem:[%s5773_s6 + $0x40] sm:$0xff]  ;;  %v2425_v20 = vld [vmem:[%s5773_s6 + $0x68] sm:$0xff] }
 0x376   : > { %4621 = vtanh.f32 %v5293_v31  ;;  %v5303_v34 = vsel %vm2450_vm2, %v2730_v8, %v2734_v30  ;;  %v2856_v36 = vrot.slane %v2406_v43, 4  ;;  %v2977_v37 = vrot.slane %v2365_v9, 2  ;;  %v2424_v24 = vld [vmem:[%s5773_s6 + $0x60] sm:$0xff]  ;;  %v2429_v8 = vld [vmem:[%s5773_s6 + $0x88] sm:$0xff]  ;;  %v2431_v30 = vld [vmem:[%s5773_s6 + $0x98] sm:$0xff] }
 0x377   : > { %v2981_v26 = vrot.slane %v2404_v2, 2  ;;  %v5306_v38 = vsel %vm2450_vm2, %v2365_v9, %v2855_v35  ;;  %v2978_v41 = vrot.slane %v2367_v16, 2  ;;  %v2982_v28 = vrot.slane %v2406_v43, 2 }
 0x378   : > { %v5309_v44 = vsel %vm2450_vm2, %v2367_v16, %v2856_v36  ;;  %v3101_v23 = vrot.slane %v2365_v9, 4  ;;  %v3102_v46 = vrot.slane %v2367_v16, 4  ;;  %v3221_v48 = vrot.slane %v2365_v9, 6 }
 0x379   : > { %v5312_v45 = vsel %vm2450_vm2, %v2977_v37, %v2981_v26  ;;  %v5315_v47 = vsel %vm2450_vm2, %v2978_v41, %v2982_v28  ;;  %v3225_v49 = vrot.slane %v2404_v2, 6  ;;  %v3222_v14 = vrot.slane %v2367_v16, 6  ;;  %v2428_v37 = vld [vmem:[%s5773_s6 + $0x80] sm:$0xff]  ;;  %v2430_v26 = vld [vmem:[%s5773_s6 + $0x90] sm:$0xff]  ;;  %v2433_v41 = vld [vmem:[%s5773_s6 + $0xa8] sm:$0xff] }
 0x37a   : > { %v5318_v50 = vsel %vm2450_vm2, %v3101_v23, %v2404_v2  ;;  %v5321_v51 = vsel %vm2450_vm2, %v3102_v46, %v2406_v43  ;;  %v3226_v52 = vrot.slane %v2406_v43, 6  ;;  %v3777_v58 = vmul.f32 -1.442695, %v2451_v27  ;;  %v2413_v2 = vld [vmem:[%s5773_s6 + $0x8] sm:$0xff]  ;;  %v2414_v43 = vld [vmem:[%s5773_s6 + $0x10] sm:$0xff]  ;;  %v2435_v28 = vld [vmem:[%s5773_s6 + $0xb8] sm:$0xff] }
 0x37b   : > { %v5324_v54 = vsel %vm2450_vm2, %v3221_v48, %v3225_v49  ;;  %v5343_v53 = vpack.c.bf16 %v2415_v3, %v2413_v2  ;;  %v5354_v9 = vpack.c.bf16 %v2414_v43, %v2412_v4  ;;  %v5356_v10 = vpack.c.bf16 %v2419_v7, %v2417_v6  ;;  %v2426_v27 = vld [vmem:[%s5773_s6 + $0x70] sm:$0xff]  ;;  %v2432_v48 = vld [vmem:[%s5773_s6 + $0xa0] sm:$0xff]  ;;  %v2443_v2 = vld [vmem:[%s5773_s6 + $0xf8] sm:$0xff] }
 0x37c   : > { %v5327_v55 = vsel %vm2450_vm2, %v3222_v14, %v3226_v52  ;;  %4623 = vpow2.f32 %v3777_v58  ;;  %v5373_v16 = vpack.c.bf16 %v2418_v56, %v2416_v11  ;;  %v5377_v57 = vpack.c.bf16 %v2423_v15, %v2421_v13  ;;  %v2434_v49 = vld [vmem:[%s5773_s6 + $0xb0] sm:$0xff]  ;;  %v2437_v14 = vld [vmem:[%s5773_s6 + $0xc8] sm:$0xff]  ;;  %v2439_v52 = vld [vmem:[%s5773_s6 + $0xd8] sm:$0xff] }
 0x37d   : > { %4094 = vmatprep.subr.bf16.mxu1 %v5343_v53  ;;  %4126 = vmatprep.subr.bf16.mxu0 %v5343_v53  ;;  %v5393_v5 = vpack.c.bf16 %v2422_v18, %v2420_v19  ;;  %v5398_v25 = vpack.c.bf16 %v2427_v42, %v2425_v20  ;;  %v5414_v35 = vpack.c.bf16 %v2426_v27, %v2424_v24  ;;  %v2440_v4 = vld [vmem:[%s5773_s6 + $0xe0] sm:$0xff] }
 0x37e   : > { %4096 = vmatpush1.bf16.msra.mxu1 %v5354_v9  ;;  %4128 = vmatpush1.bf16.msra.mxu0 %v5354_v9  ;;  %v5418_v36 = vpack.c.bf16 %v2431_v30, %v2429_v8  ;;  %v5434_v23 = vpack.c.bf16 %v2430_v26, %v2428_v37  ;;  %v5438_v46 = vpack.c.bf16 %v2435_v28, %v2433_v41 }
 0x37f   : > { %4098 = vmatprep.subr.bf16.mxu1 %v5356_v10  ;;  %4130 = vmatprep.subr.bf16.mxu0 %v5356_v10  ;;  %v5458_v58 = vpack.c.bf16 %v2439_v52, %v2437_v14 }
 0x380   : > { %v4622_v40 = vpop.eup %4621 }
 0x381   : > { %2468 = vrot.lane.b32.xlu0 %v4622_v40, %s4761_s23  ;;  %v5454_v40 = vpack.c.bf16 %v2434_v49, %v2432_v48 }
 0x382   : > { %4100 = vmatpush1.bf16.msra.mxu1 %v5373_v16  ;;  %4132 = vmatpush1.bf16.msra.mxu0 %v5373_v16 }
 0x383   : > { %4102 = vmatprep.subr.bf16.mxu1 %v5377_v57  ;;  %4134 = vmatprep.subr.bf16.mxu0 %v5377_v57 }
 0x386   : > { %v4624_v59 = vpop.eup %4623  ;;  %4104 = vmatpush1.bf16.msra.mxu1 %v5393_v5  ;;  %4136 = vmatpush1.bf16.msra.mxu0 %v5393_v5 }
 0x387   : > { %v2459_v60 = vadd.f32 1.0, %v4624_v59  ;;  %4106 = vmatprep.subr.bf16.mxu1 %v5398_v25  ;;  %4138 = vmatprep.subr.bf16.mxu0 %v5398_v25  ;;  %v2436_v59 = vld [vmem:[%s5773_s6 + $0xc0] sm:$0xff] }
 0x389   : > { %4625 = vrcp.f32 %v2459_v60  ;;  %v2438_v60 = vld [vmem:[%s5773_s6 + $0xd0] sm:$0xff] }
 0x38a   : > { %4108 = vmatpush1.bf16.msra.mxu1 %v5414_v35  ;;  %4140 = vmatpush1.bf16.msra.mxu0 %v5414_v35 }
 0x38b   : > { %4110 = vmatprep.subr.bf16.mxu1 %v5418_v36  ;;  %4142 = vmatprep.subr.bf16.mxu0 %v5418_v36 }
 0x38e   : > { %4112 = vmatpush1.bf16.msra.mxu1 %v5434_v23  ;;  %4144 = vmatpush1.bf16.msra.mxu0 %v5434_v23 }
 0x38f   : > { %4114 = vmatprep.subr.bf16.mxu1 %v5438_v46  ;;  %4146 = vmatprep.subr.bf16.mxu0 %v5438_v46 }
 0x392   : > { %4116 = vmatpush1.bf16.msra.mxu1 %v5454_v40  ;;  %4148 = vmatpush1.bf16.msra.mxu0 %v5454_v40 }
 0x393   : > { %v4626_v61 = vpop.eup %4625  ;;  %4118 = vmatprep.subr.bf16.mxu1 %v5458_v58  ;;  %4150 = vmatprep.subr.bf16.mxu0 %v5458_v58 }
 0x394   : > { %v2466_v0 = vmul.f32 0.0, %v4626_v61 }
 0x3f3   : > { %v2469_v62 = vpop.permute.xlu0 %2468 }
 0x3f4   : > { %v2471_v63 = vmul.f32 %v4626_v61, %v2469_v62  ;;  %v5468_v61 = vpack.c.bf16 %v2438_v60, %v2436_v59  ;;  %v3778_v62 = vmul.f32 -1.442695, %v5293_v31  ;;  %v2442_v31 = vld [vmem:[%s5773_s6 + $0xf0] sm:$0xff] }
 0x3f5   : > { %v5490_v43 = vpack.c.bf16 %v2442_v31, %v2440_v4 }
 0x3f6   : > { %2473 = vrot.lane.b32.xlu0 %v2471_v63, %s4761_s23  ;;  %4120 = vmatpush1.bf16.msra.mxu1 %v5468_v61 }
 0x3f7   : > { %4152 = vmatpush1.bf16.msra.mxu0 %v5468_v61 }
 0x468   : > { %v2474_v1 = vpop.permute.xlu0 %2473 }
 0x469   : > { %v5331_v39 = vadd.f32 %v2474_v1, %v2466_v0  ;;  %v2441_v1 = vld [vmem:[%s5773_s6 + $0xe8] sm:$0xff] }
 0x46a   : > { %v5482_v3 = vpack.c.bf16 %v2443_v2, %v2441_v1 }
 0x46b   : > { %4627 = vtanh.f32 %v5331_v39 }
 0x46c   : > { %4629 = vpow2.f32 %v3778_v62  ;;  %4122 = vmatprep.subr.bf16.mxu1 %v5482_v3  ;;  %4154 = vmatprep.subr.bf16.mxu0 %v5482_v3 }
 0x46d   : > { %4124 = vmatpush1.bf16.msra.mxu1 %v5490_v43  ;;  %4156 = vmatpush1.bf16.msra.mxu0 %v5490_v43 }
 0x46e   : > { %4158 = vmatprep.subr.bf16.mxu1 %v5343_v53  ;;  %4190 = vmatprep.subr.bf16.mxu0 %v5343_v53 }
 0x475   : > { %v4628_v21 = vpop.eup %4627 }
 0x476   : > { %2479 = vrot.lane.b32.xlu1 %v4628_v21, %s4761_s23  ;;  %v4630_v63 = vpop.eup %4629 }
 0x477   : > { %v2460_v0 = vadd.f32 1.0, %v4630_v63 }
 0x479   : > { %4631 = vrcp.f32 %v2460_v0 }
 0x483   : > { %v4632_v6 = vpop.eup %4631 }
 0x4e8   : > { %v2480_v7 = vpop.permute.xlu1 %2479 }
 0x4e9   : > { %v5498_v11 = vmul.f32 %v4632_v6, %v2480_v7 }
 0x4eb   : > { %v2497_v56 = vrot.slane %v5498_v11, 2  ;;  %v2495_v18 = vsel %vm2066_vm1, %v5498_v11, 0.0 }
 0x4ed   : > { %2498 = vrot.lane.b32.xlu1 %v2497_v56, %s4761_s23 }
 0x55f   : > { %v5502_v13 = vpop.permute.xlu1 %2498 }
 0x560   : > { %v2501_v15 = vsel %vm2066_vm1, 0.0, %v5502_v13 }
 0x561   : > { %v2503_v19 = vrot.slane %v2501_v15, 6 }
 0x563   : > { %v2505_v20 = vsel %vm2450_vm2, %v2495_v18, %v2503_v19 }
 0x564   : > { %2571 = vmatmul.mubr.f32.vlgmr.msra.gmra.mrb[8].mxu1 %v2505_v20 }
 0x565   : > { %4160 = vmatpush1.bf16.msra.mxu1 %v5354_v9  ;;  %2814 = vmatprep.mubr.f32.mxu1 %v4758_v17 }
 0x566   : > { %4162 = vmatprep.subr.bf16.mxu1 %v5356_v10 }
 0x569   : > { %4164 = vmatpush1.bf16.msra.mxu1 %v5373_v16 }
 0x56a   : > { %4166 = vmatprep.subr.bf16.mxu1 %v5377_v57 }
 0x56d   : > { %4168 = vmatpush1.bf16.msra.mxu1 %v5393_v5 }
 0x56e   : > { %4170 = vmatprep.subr.bf16.mxu1 %v5398_v25 }
 0x571   : > { %4172 = vmatpush1.bf16.msra.mxu1 %v5414_v35 }
 0x572   : > { %4174 = vmatprep.subr.bf16.mxu1 %v5418_v36 }
 0x575   : > { %4176 = vmatpush1.bf16.msra.mxu1 %v5434_v23 }
 0x576   : > { %4178 = vmatprep.subr.bf16.mxu1 %v5438_v46 }
 0x579   : > { %4180 = vmatpush1.bf16.msra.mxu1 %v5454_v40 }
 0x57a   : > { %4182 = vmatprep.subr.bf16.mxu1 %v5458_v58 }
 0x57d   : > { %4184 = vmatpush1.bf16.msra.mxu1 %v5468_v61 }
 0x57e   : > { %4186 = vmatprep.subr.bf16.mxu1 %v5482_v3 }
 0x581   : > { %4188 = vmatpush1.bf16.msra.mxu1 %v5490_v43 }
 0x582   : > { %4222 = vmatprep.subr.bf16.mxu1 %v5343_v53 }
 0x637   : > { %v2572_v42 = vpop.f32.mrb[8].mxu1 }
 0x638   : > { %v2577_v21 = vadd.f32 %v2572_v42, %v5290_v29  ;;  %v2574_v24 = vpop.f32.mrb[9].mxu1 }
 0x639   : > { %v2578_v27 = vadd.f32 %v2574_v24, %v5296_v32 }
 0x63a   : > { %v3779_v30 = vmul.f32 -1.442695, %v2577_v21 }
 0x63b   : > { %4633 = vtanh.f32 %v2578_v27  ;;  %v3780_v52 = vmul.f32 -1.442695, %v2578_v27 }
 0x63c   : > { %4635 = vpow2.f32 %v3779_v30 }
 0x645   : > { %v4634_v8 = vpop.eup %4633 }
 0x646   : > { %2594 = vrot.lane.b32.xlu0 %v4634_v8, %s4761_s23  ;;  %v4636_v37 = vpop.eup %4635 }
 0x647   : > { %v2585_v26 = vadd.f32 1.0, %v4636_v37 }
 0x649   : > { %4637 = vrcp.f32 %v2585_v26 }
 0x653   : > { %v4638_v41 = vpop.eup %4637 }
 0x654   : > { %v2592_v49 = vmul.f32 %v4638_v41, %v5331_v39 }
 0x6b8   : > { %v2595_v28 = vpop.permute.xlu0 %2594 }
 0x6b9   : > { %v2597_v48 = vmul.f32 %v4638_v41, %v2595_v28 }
 0x6bb   : > { %2599 = vrot.lane.b32.xlu1 %v2597_v48, %s4761_s23 }
 0x72d   : > { %v2600_v29 = vpop.permute.xlu1 %2599 }
 0x72e   : > { %v2602_v14 = vadd.f32 %v2600_v29, %v2592_v49 }
 0x730   : > { %4639 = vtanh.f32 %v2602_v14 }
 0x731   : > { %4641 = vpow2.f32 %v3780_v52 }
 0x73a   : > { %v4640_v32 = vpop.eup %4639 }
 0x73b   : > { %2605 = vrot.lane.b32.xlu0 %v4640_v32, %s4761_s23  ;;  %v4642_v59 = vpop.eup %4641 }
 0x73c   : > { %v2586_v60 = vadd.f32 1.0, %v4642_v59 }
 0x73e   : > { %4643 = vrcp.f32 %v2586_v60 }
 0x748   : > { %v4644_v62 = vpop.eup %4643 }
 0x7ad   : > { %v2606_v63 = vpop.permute.xlu0 %2605 }
 0x7ae   : > { %v5532_v0 = vmul.f32 %v4644_v62, %v2606_v63 }
 0x7b0   : > { %v2617_v1 = vrot.slane %v5532_v0, 2  ;;  %v2615_v31 = vsel %vm2066_vm1, %v5532_v0, 0.0 }
 0x7b2   : > { %2618 = vrot.lane.b32.xlu1 %v2617_v1, %s4761_s23 }
 0x824   : > { %v5536_v39 = vpop.permute.xlu1 %2618 }
 0x825   : > { %v2621_v2 = vsel %vm2066_vm1, 0.0, %v5536_v39 }
 0x826   : > { %v2623_v4 = vrot.slane %v2621_v2, 6 }
 0x828   : > { %v2625_v6 = vsel %vm2450_vm2, %v2615_v31, %v2623_v4 }
 0x829   : > { %2691 = vmatmul.mubr.f32.vlgmr.msra.gmra.mrb[4].mxu0 %v2625_v6 }
 0x82a   : > { %4192 = vmatpush1.bf16.msra.mxu0 %v5354_v9  ;;  %2936 = vmatprep.mubr.f32.mxu0 %v4758_v17 }
 0x82b   : > { %4194 = vmatprep.subr.bf16.mxu0 %v5356_v10 }
 0x82e   : > { %4196 = vmatpush1.bf16.msra.mxu0 %v5373_v16 }
 0x82f   : > { %4198 = vmatprep.subr.bf16.mxu0 %v5377_v57 }
 0x832   : > { %4200 = vmatpush1.bf16.msra.mxu0 %v5393_v5 }
 0x833   : > { %4202 = vmatprep.subr.bf16.mxu0 %v5398_v25 }
 0x836   : > { %4204 = vmatpush1.bf16.msra.mxu0 %v5414_v35 }
 0x837   : > { %4206 = vmatprep.subr.bf16.mxu0 %v5418_v36 }
 0x83a   : > { %4208 = vmatpush1.bf16.msra.mxu0 %v5434_v23 }
 0x83b   : > { %4210 = vmatprep.subr.bf16.mxu0 %v5438_v46 }
 0x83e   : > { %4212 = vmatpush1.bf16.msra.mxu0 %v5454_v40 }
 0x83f   : > { %4214 = vmatprep.subr.bf16.mxu0 %v5458_v58 }
 0x842   : > { %4216 = vmatpush1.bf16.msra.mxu0 %v5468_v61 }
 0x843   : > { %4218 = vmatprep.subr.bf16.mxu0 %v5482_v3 }
 0x846   : > { %4220 = vmatpush1.bf16.msra.mxu0 %v5490_v43 }
 0x847   : > { %4254 = vmatprep.subr.bf16.mxu0 %v5343_v53 }
 0x8fc   : > { %v2692_v7 = vpop.f32.mrb[4].mxu0 }
 0x8fd   : > { %v2697_v56 = vadd.f32 %v2692_v7, %v5283_v12  ;;  %v2694_v15 = vpop.f32.mrb[5].mxu0 }
 0x8fe   : > { %v2698_v19 = vadd.f32 %v2694_v15, %v5286_v22 }
 0x8ff   : > { %v3781_v20 = vmul.f32 -1.442695, %v2697_v56 }
 0x900   : > { %4645 = vtanh.f32 %v2698_v19  ;;  %v3782_v22 = vmul.f32 -1.442695, %v2698_v19 }
 0x901   : > { %4647 = vpow2.f32 %v3781_v20 }
 0x90a   : > { %v4646_v18 = vpop.eup %4645 }
 0x90b   : > { %2714 = vrot.lane.b32.xlu0 %v4646_v18, %s4761_s23  ;;  %v4648_v42 = vpop.eup %4647 }
 0x90c   : > { %v2705_v21 = vadd.f32 1.0, %v4648_v42 }
 0x90e   : > { %4649 = vrcp.f32 %v2705_v21 }
 0x918   : > { %v4650_v24 = vpop.eup %4649 }
 0x919   : > { %v2712_v30 = vmul.f32 %v4650_v24, %v2602_v14 }
 0x97d   : > { %v2715_v27 = vpop.permute.xlu0 %2714 }
 0x97e   : > { %v2717_v8 = vmul.f32 %v4650_v24, %v2715_v27 }
 0x980   : > { %2719 = vrot.lane.b32.xlu1 %v2717_v8, %s4761_s23 }
 0x9f2   : > { %v2720_v37 = vpop.permute.xlu1 %2719 }
 0x9f3   : > { %v2722_v12 = vadd.f32 %v2720_v37, %v2712_v30 }
 0x9f5   : > { %4651 = vtanh.f32 %v2722_v12 }
 0x9f6   : > { %4653 = vpow2.f32 %v3782_v22 }
 0x9ff   : > { %v4652_v26 = vpop.eup %4651 }
 0xa00   : > { %2725 = vrot.lane.b32.xlu0 %v4652_v26, %s4761_s23  ;;  %v4654_v41 = vpop.eup %4653 }
 0xa01   : > { %v2706_v28 = vadd.f32 1.0, %v4654_v41 }
 0xa03   : > { %4655 = vrcp.f32 %v2706_v28 }
 0xa0d   : > { %v4656_v48 = vpop.eup %4655 }
 0xa72   : > { %v2726_v49 = vpop.permute.xlu0 %2725 }
 0xa73   : > { %v5565_v29 = vmul.f32 %v4656_v48, %v2726_v49 }
 0xa75   : > { %v2741_v32 = vrot.slane %v5565_v29, 2  ;;  %v2739_v60 = vsel %vm2066_vm1, %v5565_v29, 0.0 }
 0xa77   : > { %2742 = vrot.lane.b32.xlu1 %v2741_v32, %s4761_s23 }
 0xae9   : > { %v5569_v14 = vpop.permute.xlu1 %2742 }
 0xaea   : > { %v2745_v52 = vsel %vm2066_vm1, 0.0, %v5569_v14 }
 0xaeb   : > { %v2747_v59 = vrot.slane %v2745_v52, 6 }
 0xaed   : > { %v2749_v62 = vsel %vm2450_vm2, %v2739_v60, %v2747_v59 }
 0xaee   : > { %2815 = vmatmul.mubr.f32.vlgmr.msra.gmra.mrb[10].mxu1 %v2749_v62 }
 0xaef   : > { %4224 = vmatpush1.bf16.msra.mxu1 %v5354_v9  ;;  %3062 = vmatprep.mubr.f32.mxu1 %v4758_v17 }
 0xaf0   : > { %4226 = vmatprep.subr.bf16.mxu1 %v5356_v10 }
 0xaf3   : > { %4228 = vmatpush1.bf16.msra.mxu1 %v5373_v16 }
 0xaf4   : > { %4230 = vmatprep.subr.bf16.mxu1 %v5377_v57 }
 0xaf7   : > { %4232 = vmatpush1.bf16.msra.mxu1 %v5393_v5 }
 0xaf8   : > { %4234 = vmatprep.subr.bf16.mxu1 %v5398_v25 }
 0xafb   : > { %4236 = vmatpush1.bf16.msra.mxu1 %v5414_v35 }
 0xafc   : > { %4238 = vmatprep.subr.bf16.mxu1 %v5418_v36 }
 0xaff   : > { %4240 = vmatpush1.bf16.msra.mxu1 %v5434_v23 }
 0xb00   : > { %4242 = vmatprep.subr.bf16.mxu1 %v5438_v46 }
 0xb03   : > { %4244 = vmatpush1.bf16.msra.mxu1 %v5454_v40 }
 0xb04   : > { %4246 = vmatprep.subr.bf16.mxu1 %v5458_v58 }
 0xb07   : > { %4248 = vmatpush1.bf16.msra.mxu1 %v5468_v61 }
 0xb08   : > { %4250 = vmatprep.subr.bf16.mxu1 %v5482_v3 }
 0xb0b   : > { %4252 = vmatpush1.bf16.msra.mxu1 %v5490_v43 }
 0xb0c   : > { %4286 = vmatprep.subr.bf16.mxu1 %v5343_v53 }
 0xbc1   : > { %v2816_v63 = vpop.f32.mrb[10].mxu1 }
 0xbc2   : > { %v2821_v1 = vadd.f32 %v2816_v63, %v5299_v33  ;;  %v2818_v2 = vpop.f32.mrb[11].mxu1 }
 0xbc3   : > { %v2822_v4 = vadd.f32 %v2818_v2, %v5303_v34 }
 0xbc4   : > { %v3783_v6 = vmul.f32 -1.442695, %v2821_v1 }
 0xbc5   : > { %4657 = vtanh.f32 %v2822_v4  ;;  %v3784_v34 = vmul.f32 -1.442695, %v2822_v4 }
 0xbc6   : > { %4659 = vpow2.f32 %v3783_v6 }
 0xbcf   : > { %v4658_v31 = vpop.eup %4657 }
 0xbd0   : > { %2838 = vrot.lane.b32.xlu0 %v4658_v31, %s4761_s23  ;;  %v4660_v7 = vpop.eup %4659 }
 0xbd1   : > { %v2829_v56 = vadd.f32 1.0, %v4660_v7 }
 0xbd3   : > { %4661 = vrcp.f32 %v2829_v56 }
 0xbdd   : > { %v4662_v15 = vpop.eup %4661 }
 0xbde   : > { %v2836_v53 = vmul.f32 %v4662_v15, %v2722_v12 }
 0xc42   : > { %v2839_v19 = vpop.permute.xlu0 %2838 }
 0xc43   : > { %v2841_v18 = vmul.f32 %v4662_v15, %v2839_v19 }
 0xc45   : > { %2843 = vrot.lane.b32.xlu1 %v2841_v18, %s4761_s23 }
 0xcb7   : > { %v2844_v20 = vpop.permute.xlu1 %2843 }
 0xcb8   : > { %v2846_v33 = vadd.f32 %v2844_v20, %v2836_v53 }
 0xcba   : > { %4663 = vtanh.f32 %v2846_v33 }
 0xcbb   : > { %4665 = vpow2.f32 %v3784_v34 }
 0xcc4   : > { %v4664_v42 = vpop.eup %4663 }
 0xcc5   : > { %2849 = vrot.lane.b32.xlu0 %v4664_v42, %s4761_s23  ;;  %v4666_v21 = vpop.eup %4665 }
 0xcc6   : > { %v2830_v24 = vadd.f32 1.0, %v4666_v21 }
 0xcc8   : > { %4667 = vrcp.f32 %v2830_v24 }
 0xcd2   : > { %v4668_v27 = vpop.eup %4667 }
 0xd37   : > { %v2850_v8 = vpop.permute.xlu0 %2849 }
 0xd38   : > { %v5598_v30 = vmul.f32 %v4668_v27, %v2850_v8 }
 0xd3a   : > { %v2863_v37 = vrot.slane %v5598_v30, 2  ;;  %v2861_v41 = vsel %vm2066_vm1, %v5598_v30, 0.0 }
 0xd3c   : > { %2864 = vrot.lane.b32.xlu1 %v2863_v37, %s4761_s23 }
 0xdae   : > { %v5602_v12 = vpop.permute.xlu1 %2864 }
 0xdaf   : > { %v2867_v26 = vsel %vm2066_vm1, 0.0, %v5602_v12 }
 0xdb0   : > { %v2869_v22 = vrot.slane %v2867_v26, 6 }
 0xdb2   : > { %v2871_v28 = vsel %vm2450_vm2, %v2861_v41, %v2869_v22 }
 0xdb3   : > { %2937 = vmatmul.mubr.f32.vlgmr.msra.gmra.mrb[6].mxu0 %v2871_v28 }
 0xdb4   : > { %4256 = vmatpush1.bf16.msra.mxu0 %v5354_v9  ;;  %3182 = vmatprep.mubr.f32.mxu0 %v4758_v17 }
 0xdb5   : > { %4258 = vmatprep.subr.bf16.mxu0 %v5356_v10 }
 0xdb8   : > { %4260 = vmatpush1.bf16.msra.mxu0 %v5373_v16 }
 0xdb9   : > { %4262 = vmatprep.subr.bf16.mxu0 %v5377_v57 }
 0xdbc   : > { %4264 = vmatpush1.bf16.msra.mxu0 %v5393_v5 }
 0xdbd   : > { %4266 = vmatprep.subr.bf16.mxu0 %v5398_v25 }
 0xdc0   : > { %4268 = vmatpush1.bf16.msra.mxu0 %v5414_v35 }
 0xdc1   : > { %4270 = vmatprep.subr.bf16.mxu0 %v5418_v36 }
 0xdc4   : > { %4272 = vmatpush1.bf16.msra.mxu0 %v5434_v23 }
 0xdc5   : > { %4274 = vmatprep.subr.bf16.mxu0 %v5438_v46 }
 0xdc8   : > { %4276 = vmatpush1.bf16.msra.mxu0 %v5454_v40 }
 0xdc9   : > { %4278 = vmatprep.subr.bf16.mxu0 %v5458_v58 }
 0xdcc   : > { %4280 = vmatpush1.bf16.msra.mxu0 %v5468_v61 }
 0xdcd   : > { %4282 = vmatprep.subr.bf16.mxu0 %v5482_v3 }
 0xdd0   : > { %4284 = vmatpush1.bf16.msra.mxu0 %v5490_v43 }
 0xdd1   : > { %4073 = vmatprep.subr.bf16.mxu0 %v4758_v17 }
 0xe86   : > { %v2938_v48 = vpop.f32.mrb[6].mxu0 }
 0xe87   : > { %v2943_v49 = vadd.f32 %v2938_v48, %v5306_v38  ;;  %v2940_v32 = vpop.f32.mrb[7].mxu0 }
 0xe88   : > { %v2944_v52 = vadd.f32 %v2940_v32, %v5309_v44 }
 0xe89   : > { %v3785_v60 = vmul.f32 -1.442695, %v2943_v49 }
 0xe8a   : > { %4669 = vtanh.f32 %v2944_v52  ;;  %v3786_v44 = vmul.f32 -1.442695, %v2944_v52 }
 0xe8b   : > { %4671 = vpow2.f32 %v3785_v60 }
 0xe94   : > { %v4670_v59 = vpop.eup %4669 }
 0xe95   : > { %2960 = vrot.lane.b32.xlu0 %v4670_v59, %s4761_s23  ;;  %v4672_v62 = vpop.eup %4671 }
 0xe96   : > { %v2951_v63 = vadd.f32 1.0, %v4672_v62 }
 0xe98   : > { %4673 = vrcp.f32 %v2951_v63 }
 0xea2   : > { %v4674_v1 = vpop.eup %4673 }
 0xea3   : > { %v2958_v31 = vmul.f32 %v4674_v1, %v2846_v33 }
 0xf07   : > { %v2961_v2 = vpop.permute.xlu0 %2960 }
 0xf08   : > { %v2963_v4 = vmul.f32 %v4674_v1, %v2961_v2 }
 0xf0a   : > { %2965 = vrot.lane.b32.xlu1 %v2963_v4, %s4761_s23 }
 0xf7c   : > { %v2966_v6 = vpop.permute.xlu1 %2965 }
 0xf7d   : > { %v2968_v38 = vadd.f32 %v2966_v6, %v2958_v31 }
 0xf7f   : > { %4675 = vtanh.f32 %v2968_v38 }
 0xf80   : > { %4677 = vpow2.f32 %v3786_v44 }
 0xf89   : > { %v4676_v7 = vpop.eup %4675 }
 0xf8a   : > { %2971 = vrot.lane.b32.xlu0 %v4676_v7, %s4761_s23  ;;  %v4678_v56 = vpop.eup %4677 }
 0xf8b   : > { %v2952_v15 = vadd.f32 1.0, %v4678_v56 }
 0xf8d   : > { %4679 = vrcp.f32 %v2952_v15 }
 0xf97   : > { %v4680_v19 = vpop.eup %4679 }
 0xffc   : > { %v2972_v18 = vpop.permute.xlu0 %2971 }
 0xffd   : > { %v2974_v53 = vmul.f32 %v4680_v19, %v2972_v18 }
 0xfff   : > { %v2989_v20 = vrot.slane %v2974_v53, 2  ;;  %v2987_v21 = vsel %vm2066_vm1, %v2974_v53, 0.0  ;;  %v3354_v48 = vsel %vm2066_vm1, %v2974_v53, %v5602_v12 }
0x1001   : > { %2990 = vrot.lane.b32.xlu1 %v2989_v20, %s4761_s23 }
0x1073   : > { %v5632_v42 = vpop.permute.xlu1 %2990 }
0x1074   : > { %v2993_v33 = vsel %vm2066_vm1, 0.0, %v5632_v42 }
0x1075   : > { %v2995_v34 = vrot.slane %v2993_v33, 6 }
0x1077   : > { %v2997_v24 = vsel %vm2450_vm2, %v2987_v21, %v2995_v34 }
0x1078   : > { %3063 = vmatmul.mubr.f32.vlgmr.msra.gmra.mrb[12].mxu1 %v2997_v24 }
0x1079   : > { %4288 = vmatpush1.bf16.msra.mxu1 %v5354_v9  ;;  %3306 = vmatprep.mubr.f32.mxu1 %v4758_v17 }
0x107a   : > { %4290 = vmatprep.subr.bf16.mxu1 %v5356_v10 }
0x107d   : > { %4292 = vmatpush1.bf16.msra.mxu1 %v5373_v16 }
0x107e   : > { %4294 = vmatprep.subr.bf16.mxu1 %v5377_v57 }
0x1081   : > { %4296 = vmatpush1.bf16.msra.mxu1 %v5393_v5 }
0x1082   : > { %4298 = vmatprep.subr.bf16.mxu1 %v5398_v25 }
0x1085   : > { %4300 = vmatpush1.bf16.msra.mxu1 %v5414_v35 }
0x1086   : > { %4302 = vmatprep.subr.bf16.mxu1 %v5418_v36 }
0x1089   : > { %4304 = vmatpush1.bf16.msra.mxu1 %v5434_v23 }
0x108a   : > { %4306 = vmatprep.subr.bf16.mxu1 %v5438_v46 }
0x108d   : > { %4308 = vmatpush1.bf16.msra.mxu1 %v5454_v40 }
0x108e   : > { %4310 = vmatprep.subr.bf16.mxu1 %v5458_v58 }
0x1091   : > { %4312 = vmatpush1.bf16.msra.mxu1 %v5468_v61 }
0x1092   : > { %4314 = vmatprep.subr.bf16.mxu1 %v5482_v3 }
0x1095   : > { %4316 = vmatpush1.bf16.msra.mxu1 %v5490_v43 }
0x114b   : > { %v3064_v9 = vpop.f32.mrb[12].mxu1 }
0x114c   : > { %v3069_v10 = vadd.f32 %v3064_v9, %v5312_v45  ;;  %v3066_v16 = vpop.f32.mrb[13].mxu1 }
0x114d   : > { %v3070_v57 = vadd.f32 %v3066_v16, %v5315_v47 }
0x114e   : > { %v3787_v25 = vmul.f32 -1.442695, %v3069_v10 }
0x114f   : > { %4681 = vtanh.f32 %v3070_v57  ;;  %v3788_v47 = vmul.f32 -1.442695, %v3070_v57 }
0x1150   : > { %4683 = vpow2.f32 %v3787_v25 }
0x1159   : > { %v4682_v5 = vpop.eup %4681 }
0x115a   : > { %3086 = vrot.lane.b32.xlu0 %v4682_v5, %s4761_s23  ;;  %v4684_v35 = vpop.eup %4683 }
0x115b   : > { %v3077_v36 = vadd.f32 1.0, %v4684_v35 }
0x115d   : > { %4685 = vrcp.f32 %v3077_v36 }
0x1167   : > { %v4686_v23 = vpop.eup %4685 }
0x1168   : > { %v3084_v58 = vmul.f32 %v4686_v23, %v2968_v38 }
0x11cc   : > { %v3087_v46 = vpop.permute.xlu0 %3086 }
0x11cd   : > { %v3089_v40 = vmul.f32 %v4686_v23, %v3087_v46 }
0x11cf   : > { %3091 = vrot.lane.b32.xlu1 %v3089_v40, %s4761_s23 }
0x1241   : > { %v3092_v61 = vpop.permute.xlu1 %3091 }
0x1242   : > { %v3094_v45 = vadd.f32 %v3092_v61, %v3084_v58 }
0x1244   : > { %4687 = vtanh.f32 %v3094_v45 }
0x1245   : > { %4689 = vpow2.f32 %v3788_v47 }
0x124e   : > { %v4688_v3 = vpop.eup %4687 }
0x124f   : > { %3097 = vrot.lane.b32.xlu0 %v4688_v3, %s4761_s23  ;;  %v4690_v43 = vpop.eup %4689 }
0x1250   : > { %v3078_v27 = vadd.f32 1.0, %v4690_v43 }
0x1252   : > { %4691 = vrcp.f32 %v3078_v27 }
0x125c   : > { %v4692_v8 = vpop.eup %4691 }
0x12c1   : > { %v3098_v37 = vpop.permute.xlu0 %3097 }
0x12c2   : > { %v3100_v26 = vmul.f32 %v4692_v8, %v3098_v37  ;;  %v4582_v37 = vld [vmem:[%s5774_s7 + $0x8] sm:$0xff]  }
0x12c4   : > { %v3355_v22 = vsel %vm2066_vm1, %v3100_v26, %v5569_v14  ;;  %v3109_v41 = vrot.slane %v3100_v26, 2  ;;  %v3107_v60 = vsel %vm2066_vm1, %v3100_v26, 0.0  ;;  %v4583_v26 = vld [vmem:[%s5774_s7 + $0x10] sm:$0xff]  }
0x12c5   : > { %v3368_v28 = vrot.slane %v3355_v22, 6 }
0x12c6   : > { %3110 = vrot.lane.b32.xlu1 %v3109_v41, %s4761_s23  ;;  %v4584_v41 = vld [vmem:[%s5774_s7 + $0x18] sm:$0xff]  }
0x12c7   : > { %v3381_v49 = vsel %vm2450_vm2, %v3354_v48, %v3368_v28  ;;  %v4585_v28 = vld [vmem:[%s5774_s7 + $0x20] sm:$0xff]   ;;  %v4586_v48 = vld [vmem:[%s5774_s7 + $0x28] sm:$0xff]  }
0x1338   : > { %v5665_v32 = vpop.permute.xlu1 %3110 }
0x1339   : > { %v3113_v52 = vsel %vm2066_vm1, 0.0, %v5665_v32 }
0x133a   : > { %v3115_v59 = vrot.slane %v3113_v52, 6 }
0x133c   : > { %v3117_v62 = vsel %vm2450_vm2, %v3107_v60, %v3115_v59 }
0x133d   : > { %3183 = vmatmul.mubr.f32.vlgmr.msra.gmra.mrb[8].mxu0 %v3117_v62  ;;  %v4588_v62 = vld [vmem:[%s5774_s7 + $0x38] sm:$0xff]  }
0x133e   : > { %4089 = vmatprep.mubr.msk.bf16.mxu0 %vm4759_vm0, %v4758_v17 }
0x1410   : > { %v3184_v14 = vpop.f32.mrb[8].mxu0 }
0x1411   : > { %v3189_v12 = vadd.f32 %v3184_v14, %v5318_v50  ;;  %v3186_v63 = vpop.f32.mrb[9].mxu0 }
0x1412   : > { %v3190_v1 = vadd.f32 %v3186_v63, %v5321_v51 }
0x1413   : > { %v3789_v4 = vmul.f32 -1.442695, %v3189_v12 }
0x1414   : > { %4693 = vtanh.f32 %v3190_v1  ;;  %v3790_v51 = vmul.f32 -1.442695, %v3190_v1 }
0x1415   : > { %4695 = vpow2.f32 %v3789_v4 }
0x141e   : > { %v4694_v2 = vpop.eup %4693 }
0x141f   : > { %3206 = vrot.lane.b32.xlu0 %v4694_v2, %s4761_s23  ;;  %v4696_v31 = vpop.eup %4695 }
0x1420   : > { %v3197_v6 = vadd.f32 1.0, %v4696_v31 }
0x1422   : > { %4697 = vrcp.f32 %v3197_v6  ;;  %v3352_v6 = vsel %vm2066_vm1, %v5565_v29, %v5665_v32  ;;  %v3793_v29 = vld [vmem:[%s5775_s8] ss:$0 sm:$0xff] }
0x142c   : > { %v4698_v38 = vpop.eup %4697 }
0x142d   : > { %v3204_v56 = vmul.f32 %v4698_v38, %v3094_v45 }
0x1491   : > { %v3207_v7 = vpop.permute.xlu0 %3206 }
0x1492   : > { %v3209_v44 = vmul.f32 %v4698_v38, %v3207_v7  ;;  %v3353_v38 = vsel %vm2066_vm1, %v5598_v30, %v5632_v42 }
0x1494   : > { %3211 = vrot.lane.b32.xlu1 %v3209_v44, %s4761_s23  ;;  %v3362_v44 = vrot.slane %v3352_v6, 4 }
0x1506   : > { %v3212_v15 = vpop.permute.xlu1 %3211 }
0x1507   : > { %v3214_v50 = vadd.f32 %v3212_v15, %v3204_v56  ;;  %v3365_v15 = vrot.slane %v3353_v38, 2 }
0x1509   : > { %4699 = vtanh.f32 %v3214_v50 }
0x150a   : > { %4701 = vpow2.f32 %v3790_v51 }
0x1513   : > { %v4700_v19 = vpop.eup %4699 }
0x1514   : > { %3217 = vrot.lane.b32.xlu0 %v4700_v19, %s4761_s23  ;;  %v4702_v18 = vpop.eup %4701 }
0x1515   : > { %v3198_v53 = vadd.f32 1.0, %v4702_v18 }
0x1517   : > { %4703 = vrcp.f32 %v3198_v53 }
0x1521   : > { %v4704_v20 = vpop.eup %4703 }
0x1586   : > { %v3218_v33 = vpop.permute.xlu0 %3217 }
0x1587   : > { %v3220_v34 = vmul.f32 %v4704_v20, %v3218_v33 }
0x1589   : > { %v3356_v21 = vsel %vm2066_vm1, %v3220_v34, %v5536_v39  ;;  %v3233_v24 = vrot.slane %v3220_v34, 2  ;;  %v3231_v25 = vsel %vm2066_vm1, %v3220_v34, 0.0 }
0x158a   : > { %v3371_v9 = vrot.slane %v3356_v21, 4 }
0x158b   : > { %3234 = vrot.lane.b32.xlu1 %v3233_v24, %s4761_s23 }
0x158c   : > { %v5682_v10 = vsel %vm3377_vm3, %v3381_v49, %v3371_v9  ;;  %v4587_v49 = vld [vmem:[%s5774_s7 + $0x30] sm:$0xff]  }
0x15fd   : > { %v5684_v16 = vpop.permute.xlu1 %3234 }
0x15fe   : > { %v3237_v57 = vsel %vm2066_vm1, 0.0, %v5684_v16  ;;  %v3351_v31 = vsel %vm2066_vm1, %v5532_v0, %v5684_v16 }
0x15ff   : > { %v3239_v5 = vrot.slane %v3237_v57, 6  ;;  %v3359_v7 = vrot.slane %v3351_v31, 6 }
0x1601   : > { %v3241_v35 = vsel %vm2450_vm2, %v3231_v25, %v3239_v5 }
0x1602   : > { %3307 = vmatmul.mubr.f32.vlgmr.msra.gmra.mrb[14].mxu1 %v3241_v35 }
0x16d5   : > { %v3308_v39 = vpop.f32.mrb[14].mxu1 }
0x16d6   : > { %v3313_v36 = vadd.f32 %v3308_v39, %v5324_v54  ;;  %v3310_v23 = vpop.f32.mrb[15].mxu1 }
0x16d7   : > { %v3314_v46 = vadd.f32 %v3310_v23, %v5327_v55  ;;  %v4581_v55 = vld [vmem:[%s5774_s7] sm:$0xff]  }
0x16d8   : > { %v3791_v58 = vmul.f32 -1.442695, %v3313_v36  ;;  %4074 = vmatpush3.bf16.msra.mxu0 %v4581_v55 }
0x16d9   : > { %4705 = vtanh.f32 %v3314_v46  ;;  %4075 = vmatprep.subr.bf16.mxu0 %v4758_v17  ;;  %v3792_v52 = vmul.f32 -1.442695, %v3314_v46 }
0x16da   : > { %4707 = vpow2.f32 %v3791_v58 }
0x16dc   : > { %4076 = vmatpush3.bf16.msra.mxu0 %v4582_v37 }
0x16dd   : > { %4077 = vmatprep.subr.bf16.mxu0 %v4758_v17 }
0x16e0   : > { %4078 = vmatpush3.bf16.msra.mxu0 %v4583_v26 }
0x16e1   : > { %4079 = vmatprep.subr.bf16.mxu0 %v4758_v17 }
0x16e3   : > { %v4706_v40 = vpop.eup %4705 }
0x16e4   : > { %3330 = vrot.lane.b32.xlu0 %v4706_v40, %s4761_s23  ;;  %v4708_v61 = vpop.eup %4707  ;;  %4080 = vmatpush3.bf16.msra.mxu0 %v4584_v41 }
0x16e5   : > { %v3321_v45 = vadd.f32 1.0, %v4708_v61  ;;  %4081 = vmatprep.subr.bf16.mxu0 %v4758_v17 }
0x16e7   : > { %4709 = vrcp.f32 %v3321_v45 }
0x16e8   : > { %4082 = vmatpush3.bf16.msra.mxu0 %v4585_v28 }
0x16e9   : > { %4083 = vmatprep.subr.bf16.mxu0 %v4758_v17 }
0x16ec   : > { %4084 = vmatpush3.bf16.msra.mxu0 %v4586_v48 }
0x16ed   : > { %4085 = vmatprep.subr.bf16.mxu0 %v4758_v17 }
0x16f0   : > { %4086 = vmatpush3.bf16.msra.mxu0 %v4587_v49 }
0x16f1   : > { %v4710_v3 = vpop.eup %4709  ;;  %4087 = vmatprep.subr.bf16.mxu0 %v4758_v17 }
0x16f2   : > { %v3328_v27 = vmul.f32 %v4710_v3, %v3214_v50 }
0x16f4   : > { %4088 = vmatpush3.bf16.msra.mxu0 %v4588_v62 }
0x1756   : > { %v3331_v47 = vpop.permute.xlu0 %3330 }
0x1757   : > { %v3333_v43 = vmul.f32 %v4710_v3, %v3331_v47 }
0x1759   : > { %3335 = vrot.lane.b32.xlu1 %v3333_v43, %s4761_s23 }
0x17cb   : > { %v3336_v8 = vpop.permute.xlu1 %3335 }
0x17cc   : > { %v3338_v54 = vadd.f32 %v3336_v8, %v3328_v27 }
0x17ce   : > { %4711 = vtanh.f32 %v3338_v54 }
0x17cf   : > { %4713 = vpow2.f32 %v3792_v52 }
0x17d8   : > { %v4712_v22 = vpop.eup %4711 }
0x17d9   : > { %3341 = vrot.lane.b32.xlu0 %v4712_v22, %s4761_s23  ;;  %v4714_v59 = vpop.eup %4713 }
0x17da   : > { %v3322_v60 = vadd.f32 1.0, %v4714_v59 }
0x17dc   : > { %4715 = vrcp.f32 %v3322_v60 }
0x17e6   : > { %v4716_v14 = vpop.eup %4715 }
0x184b   : > { %v3342_v12 = vpop.permute.xlu0 %3341 }
0x184c   : > { %v3344_v63 = vmul.f32 %v4716_v14, %v3342_v12 }
0x184e   : > { %v3346_v1 = vrot.slane %v3344_v63, 2  ;;  %v3357_v2 = vsel %vm2066_vm1, %v3344_v63, %v5502_v13 }
0x184f   : > { %v3374_v4 = vrot.slane %v3357_v2, 2 }
0x1850   : > { %3347 = vrot.lane.b32.xlu1 %v3346_v1, %s4761_s23 }
0x1851   : > { %v3383_v17 = vsel %vm3379_vm4, %v5682_v10, %v3374_v4 }
0x18c2   : > { %v3348_v13 = vpop.permute.xlu1 %3347 }
0x18c3   : > { %v3350_v56 = vsel %vm2066_vm1, %v5498_v11, %v3348_v13 }
0x18c4   : > { %v3376_v50 = vsel %vm2450_vm2, %v3350_v56, %v3359_v7 }
0x18c5   : > { %v3378_v19 = vsel %vm3377_vm3, %v3376_v50, %v3362_v44 }
0x18c6   : > { %v3380_v0 = vsel %vm3379_vm4, %v3378_v19, %v3365_v15 }
0x18c7   : > { %v3384_v51 = vpack.c.bf16 %v3383_v17, %v3380_v0 }
0x18c9   : > { %4090 = vmatmul.mubr.bf16.vlgmr.msra.gmra.mrb[12].mxu0 %v3384_v51 }
0x199c   : > { %v3490_v32 = vpop.f32.mrb[12].mxu0 }
0x199d   : > { %v3491_v30 = vadd.f32 %v3793_v29, %v3490_v32  ;;  %v4091_v42 = vpop.f32.mrb[13].mxu0 }
0x199e   : > { %v3493_v18 = vpop.f32.mrb[14].mxu0 }
0x199f   : > { %3497 = vst [vmem:[%s5776_s9] sm:$0xff] %v3491_v30  ;;  %v3494_v11 = vadd.f32 %v3793_v29, %v3493_v18  ;;  %v4092_v53 = vpop.f32.mrb[15].mxu0 }
0x19a1   : > { %3498 = vst [vmem:[%s5776_s9 + $0x8] sm:$0xff] %v3494_v11 }
0x19a2 PF: > { %s19_s13 = sadd.s32 1, %s4755_s13   ;;  %s5777_s30 = smov %s4743_s10 }
0x19a3   : > { %p16_p12 = scmp.ge.s32.totalorder %s19_s13, 4   ;;  %s5778_s10 = smov %s4847_s17 }
0x19a4   : > { %s5779_s11 = smov %s4751_s12  ;;  %s5780_s12 = smov %s5782_s14 }
0x19a5   :  { %18 = sbr.rel (!%p16_p12) target bundleno = 3 (0x3), region = 125 }

</bundles_post_ra>
